<compile_context>
chip_gen: v6e
topology: v6e:2x2x1
jax: 0.10.0
libtpu: 0.0.40
codegen_flags: <defaults>
</compile_context>

<pallas_src>
import functools

import jax
import jax.numpy as jnp
from jax.experimental import pallas as pl
from jax.experimental.pallas import tpu as pltpu

HIDDEN = 50          # true hidden width of fc1/fc2
HIDDEN_PAD = 128     # lane-padded hidden width (zero padding -> numerically exact)
IN_FEATS = 6


def _round_up(a, m):
    return (a + m - 1) // m * m


def _net_kernel(x_ref, w1t_ref, b1_ref, w2_ref, b2_ref, o_ref,
                acc1_ref, acc4_ref, acc6_ref, *,
                n_true, tn, chunk, mask_tail, inv_n):
    """Grid = (batch tiles [parallel], sample tiles [arbitrary/reduction])."""
    k = pl.program_id(1)

    @pl.when(k == 0)
    def _init():
        acc1_ref[...] = jnp.zeros_like(acc1_ref)
        acc4_ref[...] = jnp.zeros_like(acc4_ref)
        acc6_ref[...] = jnp.zeros_like(acc6_ref)

    # ---- streamed moment accumulation: static 128-lane chunks, VPU adds ----
    n_chunks = tn // chunk
    if mask_tail:
        lane_ids = jax.lax.broadcasted_iota(jnp.int32, acc1_ref.shape, 1)
        valid = n_true - k * tn            # samples still valid in this tile
    for c in range(n_chunks):
        xc = x_ref[:, c * chunk:(c + 1) * chunk]
        if mask_tail:
            # zero out lanes past the true N (select, so stale VMEM garbage
            # in partial edge blocks never reaches the arithmetic)
            xc = jnp.where(lane_ids < (valid - c * chunk), xc, 0.0)
        x2 = xc * xc                       # shared power chain
        x4 = x2 * x2
        acc1_ref[...] += jnp.abs(xc)
        acc4_ref[...] += x4
        acc6_ref[...] += x4 * x2

    # ---- epilogue: cross-lane reduce + features + fc1 + ReLU + fc2 ---------
    @pl.when(k == pl.num_programs(1) - 1)
    def _finalize():
        m1 = jnp.sum(acc1_ref[...], axis=-1, keepdims=True) * inv_n   # (TB, 1)
        m4 = jnp.sum(acc4_ref[...], axis=-1, keepdims=True) * inv_n
        m6 = jnp.sum(acc6_ref[...], axis=-1, keepdims=True) * inv_n
        m4_sqrt = jnp.sqrt(m4)
        # Intentional: EUP rsqrt instead of sqrt(1/m4); differs only in last ulps.
        m4_sqrt_inv = jax.lax.rsqrt(m4)
        s = 0.5 * jnp.sqrt(jnp.abs(6.0 - 2.0 * m4))    # m2 == 1
        est = s / (1.0 - s)                            # matches the reference

        w1t = w1t_ref[...]                             # (6, HIDDEN_PAD)
        # fc1: K = 6 is far too small for the MXU; rank-1 broadcast sums on the VPU.
        h = (m4 * w1t[0:1, :]
             + m6 * w1t[1:2, :]
             + m1 * w1t[2:3, :]
             + m4_sqrt * w1t[3:4, :]
             + m4_sqrt_inv * w1t[4:5, :]
             + est * w1t[5:6, :]
             + b1_ref[...])                            # (TB, HIDDEN_PAD)
        h = jnp.maximum(h, 0.0)                        # ReLU
        # fc2: lane reduction (padded lanes contribute relu(0)*0 == 0).
        out = jnp.sum(h * w2_ref[...], axis=-1, keepdims=True) + b2_ref[0, 0]
        o_ref[...] = out.astype(o_ref.dtype)


def _default_vmem_limit_bytes():
    # Generation-aware: ~48 MiB on v7x (64 MiB physical), 64 MiB on v5e/v6e.
    try:
        cap = int(pltpu.get_tpu_info().vmem_capacity_bytes)
    except Exception:
        cap = 64 * 1024 * 1024
    return max(32 * 1024 * 1024, min(64 * 1024 * 1024, (cap * 3) // 4))


def net_forward(x, w1, b1, w2, b2, *, tb=None, tn=None, vmem_limit_bytes=None):
    """x: (B, N) f32. w1: (HIDDEN, 6), b1: (HIDDEN,), w2: (1, HIDDEN), b2: (1,)."""
    x = jnp.asarray(x, jnp.float32)
    B, N = x.shape

    if vmem_limit_bytes is None:
        vmem_limit_bytes = _default_vmem_limit_bytes()
    block_target = min(16 * 1024 * 1024, vmem_limit_bytes // 3)   # bytes per x block

    # ---- batch tile: multiple of 8, <= B (partial edge block otherwise) ----
    if B < 8:
        tb = B                                        # full-dim block
    elif tb is None:
        tb = min((B // 8) * 8, 1024)
        # keep >= 2 batch tiles when possible so both v7x TensorCores get work
        if B >= 16 and pl.cdiv(B, tb) < 2:
            tb = min(tb, _round_up(pl.cdiv(B, 2), 8))
    else:
        tb = max(8, min((int(tb) // 8) * 8, (B // 8) * 8))

    # ---- sample tile: multiple of 128, <= N, sized from the block budget ----
    if N < 128:
        tn = N                                        # full-dim block
    elif tn is None:
        budget = max(128, ((block_target // (4 * tb)) // 128) * 128)
        tn = min(2048, (N // 128) * 128, budget)
    else:
        tn = max(128, min((int(tn) // 128) * 128, (N // 128) * 128, 2048))

    chunk = 128 if tn >= 128 else tn                  # lane-chunk / accumulator width
    mask_tail = (N % tn) != 0                         # in-kernel masking of ragged tail

    # ---- weights: transpose + zero-pad hidden dim to a full lane width ----
    w1t = jnp.zeros((IN_FEATS, HIDDEN_PAD), jnp.float32)
    w1t = w1t.at[:, :HIDDEN].set(jnp.asarray(w1, jnp.float32).T)
    b1r = jnp.zeros((1, HIDDEN_PAD), jnp.float32)
    b1r = b1r.at[:, :HIDDEN].set(jnp.asarray(b1, jnp.float32).reshape(1, HIDDEN))
    w2r = jnp.zeros((1, HIDDEN_PAD), jnp.float32)
    w2r = w2r.at[:, :HIDDEN].set(jnp.asarray(w2, jnp.float32).reshape(1, HIDDEN))
    b2r = jnp.asarray(b2, jnp.float32).reshape(1, 1)

    grid = (pl.cdiv(B, tb), pl.cdiv(N, tn))
    return pl.pallas_call(
        functools.partial(_net_kernel, n_true=N, tn=tn, chunk=chunk,
                          mask_tail=mask_tail, inv_n=1.0 / N),
        out_shape=jax.ShapeDtypeStruct((B, 1), jnp.float32),
        grid_spec=pltpu.PrefetchScalarGridSpec(
            num_scalar_prefetch=0,
            grid=grid,
            in_specs=[
                pl.BlockSpec((tb, tn), lambda i, k: (i, k)),
                pl.BlockSpec((IN_FEATS, HIDDEN_PAD), lambda i, k: (0, 0)),
                pl.BlockSpec((1, HIDDEN_PAD), lambda i, k: (0, 0)),
                pl.BlockSpec((1, HIDDEN_PAD), lambda i, k: (0, 0)),
                pl.BlockSpec(memory_space=pltpu.MemorySpace.SMEM),   # b2 scalar
            ],
            out_specs=pl.BlockSpec((tb, 1), lambda i, k: (i, 0)),
            scratch_shapes=[
                pltpu.VMEM((tb, chunk), jnp.float32),   # partial sums of |x|
                pltpu.VMEM((tb, chunk), jnp.float32),   # partial sums of x^4
                pltpu.VMEM((tb, chunk), jnp.float32),   # partial sums of x^6
            ],
        ),
        compiler_params=pltpu.CompilerParams(
            dimension_semantics=("parallel", "arbitrary"),
            vmem_limit_bytes=int(vmem_limit_bytes),
        ),
    )(x, w1t, b1r, w2r, b2r)


def net_forward_ref(x, w1, b1, w2, b2):
    """Pure-JAX reference mirroring the PyTorch forward."""
    x = x.astype(jnp.float32)
    m2 = 1.0
    m4 = jnp.mean(x ** 4, axis=1, keepdims=True)
    m4_inv = 1.0 / m4
    m4_sqrt = jnp.sqrt(m4)
    m4_sqrt_inv = jnp.sqrt(m4_inv)
    m6 = jnp.mean(x ** 6, axis=1, keepdims=True)
    m1 = jnp.mean(jnp.abs(x), axis=1, keepdims=True)
    s = 0.5 * jnp.sqrt(jnp.abs(6.0 * m2 ** 2 - 2.0 * m4))
    est = s / (m2 - s)
    feats = jnp.concatenate([m4, m6, m1, m4_sqrt, m4_sqrt_inv, est], axis=1)
    h = jax.nn.relu(feats @ w1.T + b1)
    return h @ w2.T + b2


if __name__ == "__main__":
    key = jax.random.PRNGKey(0)
    kx, k1, k2, k3, k4 = jax.random.split(key, 5)

    # Deliberately ragged small shapes: exercises the un-padded partial edge
    # blocks on both axes, the in-kernel lane masking of the ragged sample
    # tail, the multi-step sample-axis reduction and the two-batch-tile split.
    B, N = 100, 600
    x = jax.random.normal(kx, (B, N), dtype=jnp.float32)

    # Deterministic parameter init (shapes from nn.Linear(6,50) / nn.Linear(50,1)).
    w1 = jax.random.uniform(k1, (HIDDEN, IN_FEATS), jnp.float32, -0.4, 0.4)
    b1 = jax.random.uniform(k2, (HIDDEN,), jnp.float32, -0.4, 0.4)
    w2 = jax.random.uniform(k3, (1, HIDDEN), jnp.float32, -0.14, 0.14)
    b2 = jax.random.uniform(k4, (1,), jnp.float32, -0.14, 0.14)

    out = jax.block_until_ready(net_forward(x, w1, b1, w2, b2))
    ref = net_forward_ref(x, w1, b1, w2, b2)

    assert out.shape == (B, 1)
    assert bool(jnp.allclose(out, ref, atol=1e-4, rtol=1e-4)), (out, ref)
    print("KERNEL_OK")
</pallas_src>

<mosaic_0001>
module attributes {stable_mosaic.version = 11 : i64} {
  func.func @_net_kernel(%arg0: i32, %arg1: i32, %arg2: memref<96x512xf32, #tpu.memory_space<vmem>>, %arg3: memref<6x128xf32, #tpu.memory_space<vmem>>, %arg4: memref<1x128xf32, #tpu.memory_space<vmem>>, %arg5: memref<1x128xf32, #tpu.memory_space<vmem>>, %arg6: memref<1x1xf32, #tpu.memory_space<smem>>, %arg7: memref<96x1xf32, #tpu.memory_space<vmem>>, %arg8: memref<96x128xf32, #tpu.memory_space<vmem>>, %arg9: memref<96x128xf32, #tpu.memory_space<vmem>>, %arg10: memref<96x128xf32, #tpu.memory_space<vmem>>) attributes {dimension_semantics = [#tpu.dimension_semantics<parallel>, #tpu.dimension_semantics<arbitrary>], iteration_bounds = array<i64: 2, 2>, scalar_prefetch = 0 : i64, scratch_operands = 3 : i64, tpu.core_type = #tpu.core_type<tc>, window_params = [{transform_indices = @transform_0, window_bounds = array<i64: 96, 512>}, {pipeline_mode = #tpu.pipeline_mode<synchronous>, transform_indices = @transform_1, window_bounds = array<i64: 6, 128>}, {pipeline_mode = #tpu.pipeline_mode<synchronous>, transform_indices = @transform_2, window_bounds = array<i64: 1, 128>}, {pipeline_mode = #tpu.pipeline_mode<synchronous>, transform_indices = @transform_3, window_bounds = array<i64: 1, 128>}, {transform_indices = @transform_4, window_bounds = array<i64: 1, 1>}, {transform_indices = @transform_5, window_bounds = array<i64: 96, 1>}]} {
    %c0_i32 = arith.constant 0 : i32
    %0 = arith.cmpi eq, %arg1, %c0_i32 : i32
    %1 = arith.extui %0 : i1 to i32
    %c0_i32_0 = arith.constant 0 : i32
    %2 = arith.cmpi ne, %1, %c0_i32_0 : i32
    scf.if %2 {
      %cst_58 = arith.constant 0.000000e+00 : f32
      %85 = vector.broadcast %cst_58 : f32 to vector<96x128xf32>
      %c0_59 = arith.constant 0 : index
      %c0_60 = arith.constant 0 : index
      %86 = vector.load %arg8[%c0_59, %c0_60] : memref<96x128xf32, #tpu.memory_space<vmem>>, vector<96x128xf32>
      tpu.vector_store %arg8[%c0_59, %c0_60], %85 {strides = array<i32>} : memref<96x128xf32, #tpu.memory_space<vmem>>, vector<96x128xf32>,
      %cst_61 = arith.constant 0.000000e+00 : f32
      %87 = vector.broadcast %cst_61 : f32 to vector<96x128xf32>
      %c0_62 = arith.constant 0 : index
      %c0_63 = arith.constant 0 : index
      %88 = vector.load %arg9[%c0_62, %c0_63] : memref<96x128xf32, #tpu.memory_space<vmem>>, vector<96x128xf32>
      tpu.vector_store %arg9[%c0_62, %c0_63], %87 {strides = array<i32>} : memref<96x128xf32, #tpu.memory_space<vmem>>, vector<96x128xf32>,
      %cst_64 = arith.constant 0.000000e+00 : f32
      %89 = vector.broadcast %cst_64 : f32 to vector<96x128xf32>
      %c0_65 = arith.constant 0 : index
      %c0_66 = arith.constant 0 : index
      %90 = vector.load %arg10[%c0_65, %c0_66] : memref<96x128xf32, #tpu.memory_space<vmem>>, vector<96x128xf32>
      tpu.vector_store %arg10[%c0_65, %c0_66], %89 {strides = array<i32>} : memref<96x128xf32, #tpu.memory_space<vmem>>, vector<96x128xf32>,
    } else {
    }
    %3 = tpu.iota {dimensions = array<i32: 1>} : vector<96x128xi32>
    %c512_i32 = arith.constant 512 : i32
    %4 = arith.muli %arg1, %c512_i32 : i32
    %c600_i32 = arith.constant 600 : i32
    %5 = arith.subi %c600_i32, %4 : i32
    %c0 = arith.constant 0 : index
    %c0_1 = arith.constant 0 : index
    %6 = vector.load %arg2[%c0, %c0_1] : memref<96x512xf32, #tpu.memory_space<vmem>>, vector<96x128xf32>
    %c0_i32_2 = arith.constant 0 : i32
    %7 = arith.subi %5, %c0_i32_2 : i32
    %8 = vector.broadcast %7 : i32 to vector<96x128xi32>
    %9 = arith.cmpi slt, %3, %8 : vector<96x128xi32>
    %cst = arith.constant 0.000000e+00 : f32
    %10 = vector.broadcast %cst : f32 to vector<96x128xf32>
    %11 = arith.select %9, %6, %10 : vector<96x128xi1>, vector<96x128xf32>
    %12 = arith.mulf %11, %11 : vector<96x128xf32>
    %13 = arith.mulf %12, %12 : vector<96x128xf32>
    %c0_3 = arith.constant 0 : index
    %c0_4 = arith.constant 0 : index
    %14 = vector.load %arg8[%c0_3, %c0_4] : memref<96x128xf32, #tpu.memory_space<vmem>>, vector<96x128xf32>
    %15 = math.absf %11 : vector<96x128xf32>
    %16 = arith.addf %14, %15 : vector<96x128xf32>
    %c0_5 = arith.constant 0 : index
    %c0_6 = arith.constant 0 : index
    %17 = vector.load %arg8[%c0_5, %c0_6] : memref<96x128xf32, #tpu.memory_space<vmem>>, vector<96x128xf32>
    tpu.vector_store %arg8[%c0_5, %c0_6], %16 {strides = array<i32>} : memref<96x128xf32, #tpu.memory_space<vmem>>, vector<96x128xf32>,
    %c0_7 = arith.constant 0 : index
    %c0_8 = arith.constant 0 : index
    %18 = vector.load %arg9[%c0_7, %c0_8] : memref<96x128xf32, #tpu.memory_space<vmem>>, vector<96x128xf32>
    %19 = arith.addf %18, %13 : vector<96x128xf32>
    %c0_9 = arith.constant 0 : index
    %c0_10 = arith.constant 0 : index
    %20 = vector.load %arg9[%c0_9, %c0_10] : memref<96x128xf32, #tpu.memory_space<vmem>>, vector<96x128xf32>
    tpu.vector_store %arg9[%c0_9, %c0_10], %19 {strides = array<i32>} : memref<96x128xf32, #tpu.memory_space<vmem>>, vector<96x128xf32>,
    %c0_11 = arith.constant 0 : index
    %c0_12 = arith.constant 0 : index
    %21 = vector.load %arg10[%c0_11, %c0_12] : memref<96x128xf32, #tpu.memory_space<vmem>>, vector<96x128xf32>
    %22 = arith.mulf %13, %12 : vector<96x128xf32>
    %23 = arith.addf %21, %22 : vector<96x128xf32>
    %c0_13 = arith.constant 0 : index
    %c0_14 = arith.constant 0 : index
    %24 = vector.load %arg10[%c0_13, %c0_14] : memref<96x128xf32, #tpu.memory_space<vmem>>, vector<96x128xf32>
    tpu.vector_store %arg10[%c0_13, %c0_14], %23 {strides = array<i32>} : memref<96x128xf32, #tpu.memory_space<vmem>>, vector<96x128xf32>,
    %c0_15 = arith.constant 0 : index
    %c128 = arith.constant 128 : index
    %25 = vector.load %arg2[%c0_15, %c128] : memref<96x512xf32, #tpu.memory_space<vmem>>, vector<96x128xf32>
    %c128_i32 = arith.constant 128 : i32
    %26 = arith.subi %5, %c128_i32 : i32
    %27 = vector.broadcast %26 : i32 to vector<96x128xi32>
    %28 = arith.cmpi slt, %3, %27 : vector<96x128xi32>
    %cst_16 = arith.constant 0.000000e+00 : f32
    %29 = vector.broadcast %cst_16 : f32 to vector<96x128xf32>
    %30 = arith.select %28, %25, %29 : vector<96x128xi1>, vector<96x128xf32>
    %31 = arith.mulf %30, %30 : vector<96x128xf32>
    %32 = arith.mulf %31, %31 : vector<96x128xf32>
    %c0_17 = arith.constant 0 : index
    %c0_18 = arith.constant 0 : index
    %33 = vector.load %arg8[%c0_17, %c0_18] : memref<96x128xf32, #tpu.memory_space<vmem>>, vector<96x128xf32>
    %34 = math.absf %30 : vector<96x128xf32>
    %35 = arith.addf %33, %34 : vector<96x128xf32>
    %c0_19 = arith.constant 0 : index
    %c0_20 = arith.constant 0 : index
    %36 = vector.load %arg8[%c0_19, %c0_20] : memref<96x128xf32, #tpu.memory_space<vmem>>, vector<96x128xf32>
    tpu.vector_store %arg8[%c0_19, %c0_20], %35 {strides = array<i32>} : memref<96x128xf32, #tpu.memory_space<vmem>>, vector<96x128xf32>,
    %c0_21 = arith.constant 0 : index
    %c0_22 = arith.constant 0 : index
    %37 = vector.load %arg9[%c0_21, %c0_22] : memref<96x128xf32, #tpu.memory_space<vmem>>, vector<96x128xf32>
    %38 = arith.addf %37, %32 : vector<96x128xf32>
    %c0_23 = arith.constant 0 : index
    %c0_24 = arith.constant 0 : index
    %39 = vector.load %arg9[%c0_23, %c0_24] : memref<96x128xf32, #tpu.memory_space<vmem>>, vector<96x128xf32>
    tpu.vector_store %arg9[%c0_23, %c0_24], %38 {strides = array<i32>} : memref<96x128xf32, #tpu.memory_space<vmem>>, vector<96x128xf32>,
    %c0_25 = arith.constant 0 : index
    %c0_26 = arith.constant 0 : index
    %40 = vector.load %arg10[%c0_25, %c0_26] : memref<96x128xf32, #tpu.memory_space<vmem>>, vector<96x128xf32>
    %41 = arith.mulf %32, %31 : vector<96x128xf32>
    %42 = arith.addf %40, %41 : vector<96x128xf32>
    %c0_27 = arith.constant 0 : index
    %c0_28 = arith.constant 0 : index
    %43 = vector.load %arg10[%c0_27, %c0_28] : memref<96x128xf32, #tpu.memory_space<vmem>>, vector<96x128xf32>
    tpu.vector_store %arg10[%c0_27, %c0_28], %42 {strides = array<i32>} : memref<96x128xf32, #tpu.memory_space<vmem>>, vector<96x128xf32>,
    %c0_29 = arith.constant 0 : index
    %c256 = arith.constant 256 : index
    %44 = vector.load %arg2[%c0_29, %c256] : memref<96x512xf32, #tpu.memory_space<vmem>>, vector<96x128xf32>
    %c256_i32 = arith.constant 256 : i32
    %45 = arith.subi %5, %c256_i32 : i32
    %46 = vector.broadcast %45 : i32 to vector<96x128xi32>
    %47 = arith.cmpi slt, %3, %46 : vector<96x128xi32>
    %cst_30 = arith.constant 0.000000e+00 : f32
    %48 = vector.broadcast %cst_30 : f32 to vector<96x128xf32>
    %49 = arith.select %47, %44, %48 : vector<96x128xi1>, vector<96x128xf32>
    %50 = arith.mulf %49, %49 : vector<96x128xf32>
    %51 = arith.mulf %50, %50 : vector<96x128xf32>
    %c0_31 = arith.constant 0 : index
    %c0_32 = arith.constant 0 : index
    %52 = vector.load %arg8[%c0_31, %c0_32] : memref<96x128xf32, #tpu.memory_space<vmem>>, vector<96x128xf32>
    %53 = math.absf %49 : vector<96x128xf32>
    %54 = arith.addf %52, %53 : vector<96x128xf32>
    %c0_33 = arith.constant 0 : index
    %c0_34 = arith.constant 0 : index
    %55 = vector.load %arg8[%c0_33, %c0_34] : memref<96x128xf32, #tpu.memory_space<vmem>>, vector<96x128xf32>
    tpu.vector_store %arg8[%c0_33, %c0_34], %54 {strides = array<i32>} : memref<96x128xf32, #tpu.memory_space<vmem>>, vector<96x128xf32>,
    %c0_35 = arith.constant 0 : index
    %c0_36 = arith.constant 0 : index
    %56 = vector.load %arg9[%c0_35, %c0_36] : memref<96x128xf32, #tpu.memory_space<vmem>>, vector<96x128xf32>
    %57 = arith.addf %56, %51 : vector<96x128xf32>
    %c0_37 = arith.constant 0 : index
    %c0_38 = arith.constant 0 : index
    %58 = vector.load %arg9[%c0_37, %c0_38] : memref<96x128xf32, #tpu.memory_space<vmem>>, vector<96x128xf32>
    tpu.vector_store %arg9[%c0_37, %c0_38], %57 {strides = array<i32>} : memref<96x128xf32, #tpu.memory_space<vmem>>, vector<96x128xf32>,
    %c0_39 = arith.constant 0 : index
    %c0_40 = arith.constant 0 : index
    %59 = vector.load %arg10[%c0_39, %c0_40] : memref<96x128xf32, #tpu.memory_space<vmem>>, vector<96x128xf32>
    %60 = arith.mulf %51, %50 : vector<96x128xf32>
    %61 = arith.addf %59, %60 : vector<96x128xf32>
    %c0_41 = arith.constant 0 : index
    %c0_42 = arith.constant 0 : index
    %62 = vector.load %arg10[%c0_41, %c0_42] : memref<96x128xf32, #tpu.memory_space<vmem>>, vector<96x128xf32>
    tpu.vector_store %arg10[%c0_41, %c0_42], %61 {strides = array<i32>} : memref<96x128xf32, #tpu.memory_space<vmem>>, vector<96x128xf32>,
    %c0_43 = arith.constant 0 : index
    %c384 = arith.constant 384 : index
    %63 = vector.load %arg2[%c0_43, %c384] : memref<96x512xf32, #tpu.memory_space<vmem>>, vector<96x128xf32>
    %c384_i32 = arith.constant 384 : i32
    %64 = arith.subi %5, %c384_i32 : i32
    %65 = vector.broadcast %64 : i32 to vector<96x128xi32>
    %66 = arith.cmpi slt, %3, %65 : vector<96x128xi32>
    %cst_44 = arith.constant 0.000000e+00 : f32
    %67 = vector.broadcast %cst_44 : f32 to vector<96x128xf32>
    %68 = arith.select %66, %63, %67 : vector<96x128xi1>, vector<96x128xf32>
    %69 = arith.mulf %68, %68 : vector<96x128xf32>
    %70 = arith.mulf %69, %69 : vector<96x128xf32>
    %c0_45 = arith.constant 0 : index
    %c0_46 = arith.constant 0 : index
    %71 = vector.load %arg8[%c0_45, %c0_46] : memref<96x128xf32, #tpu.memory_space<vmem>>, vector<96x128xf32>
    %72 = math.absf %68 : vector<96x128xf32>
    %73 = arith.addf %71, %72 : vector<96x128xf32>
    %c0_47 = arith.constant 0 : index
    %c0_48 = arith.constant 0 : index
    %74 = vector.load %arg8[%c0_47, %c0_48] : memref<96x128xf32, #tpu.memory_space<vmem>>, vector<96x128xf32>
    tpu.vector_store %arg8[%c0_47, %c0_48], %73 {strides = array<i32>} : memref<96x128xf32, #tpu.memory_space<vmem>>, vector<96x128xf32>,
    %c0_49 = arith.constant 0 : index
    %c0_50 = arith.constant 0 : index
    %75 = vector.load %arg9[%c0_49, %c0_50] : memref<96x128xf32, #tpu.memory_space<vmem>>, vector<96x128xf32>
    %76 = arith.addf %75, %70 : vector<96x128xf32>
    %c0_51 = arith.constant 0 : index
    %c0_52 = arith.constant 0 : index
    %77 = vector.load %arg9[%c0_51, %c0_52] : memref<96x128xf32, #tpu.memory_space<vmem>>, vector<96x128xf32>
    tpu.vector_store %arg9[%c0_51, %c0_52], %76 {strides = array<i32>} : memref<96x128xf32, #tpu.memory_space<vmem>>, vector<96x128xf32>,
    %c0_53 = arith.constant 0 : index
    %c0_54 = arith.constant 0 : index
    %78 = vector.load %arg10[%c0_53, %c0_54] : memref<96x128xf32, #tpu.memory_space<vmem>>, vector<96x128xf32>
    %79 = arith.mulf %70, %69 : vector<96x128xf32>
    %80 = arith.addf %78, %79 : vector<96x128xf32>
    %c0_55 = arith.constant 0 : index
    %c0_56 = arith.constant 0 : index
    %81 = vector.load %arg10[%c0_55, %c0_56] : memref<96x128xf32, #tpu.memory_space<vmem>>, vector<96x128xf32>
    tpu.vector_store %arg10[%c0_55, %c0_56], %80 {strides = array<i32>} : memref<96x128xf32, #tpu.memory_space<vmem>>, vector<96x128xf32>,
    %c1_i32 = arith.constant 1 : i32
    %82 = arith.cmpi eq, %arg1, %c1_i32 : i32
    %83 = arith.extui %82 : i1 to i32
    %c0_i32_57 = arith.constant 0 : i32
    %84 = arith.cmpi ne, %83, %c0_i32_57 : i32
    scf.if %84 {
      %c0_58 = arith.constant 0 : index
      %c0_59 = arith.constant 0 : index
      %85 = vector.load %arg8[%c0_58, %c0_59] : memref<96x128xf32, #tpu.memory_space<vmem>>, vector<96x128xf32>
      %cst_60 = arith.constant dense<0.000000e+00> : vector<96xf32>
      %86 = vector.multi_reduction <add>, %85, %cst_60 [1] : vector<96x128xf32> to vector<96xf32>
      %87 = vector.shape_cast %86 : vector<96xf32> to vector<96x1xf32>
      %cst_61 = arith.constant 0.00166666671 : f32
      %88 = vector.broadcast %cst_61 : f32 to vector<96x1xf32>
      %89 = arith.mulf %87, %88 : vector<96x1xf32>
      %c0_62 = arith.constant 0 : index
      %c0_63 = arith.constant 0 : index
      %90 = vector.load %arg9[%c0_62, %c0_63] : memref<96x128xf32, #tpu.memory_space<vmem>>, vector<96x128xf32>
      %cst_64 = arith.constant dense<0.000000e+00> : vector<96xf32>
      %91 = vector.multi_reduction <add>, %90, %cst_64 [1] : vector<96x128xf32> to vector<96xf32>
      %92 = vector.shape_cast %91 : vector<96xf32> to vector<96x1xf32>
      %cst_65 = arith.constant 0.00166666671 : f32
      %93 = vector.broadcast %cst_65 : f32 to vector<96x1xf32>
      %94 = arith.mulf %92, %93 : vector<96x1xf32>
      %c0_66 = arith.constant 0 : index
      %c0_67 = arith.constant 0 : index
      %95 = vector.load %arg10[%c0_66, %c0_67] : memref<96x128xf32, #tpu.memory_space<vmem>>, vector<96x128xf32>
      %cst_68 = arith.constant dense<0.000000e+00> : vector<96xf32>
      %96 = vector.multi_reduction <add>, %95, %cst_68 [1] : vector<96x128xf32> to vector<96xf32>
      %97 = vector.shape_cast %96 : vector<96xf32> to vector<96x1xf32>
      %cst_69 = arith.constant 0.00166666671 : f32
      %98 = vector.broadcast %cst_69 : f32 to vector<96x1xf32>
      %99 = arith.mulf %97, %98 : vector<96x1xf32>
      %100 = math.sqrt %94 : vector<96x1xf32>
      %101 = math.rsqrt %94 : vector<96x1xf32>
      %cst_70 = arith.constant 2.000000e+00 : f32
      %102 = vector.broadcast %cst_70 : f32 to vector<96x1xf32>
      %103 = arith.mulf %102, %94 : vector<96x1xf32>
      %cst_71 = arith.constant 6.000000e+00 : f32
      %104 = vector.broadcast %cst_71 : f32 to vector<96x1xf32>
      %105 = arith.subf %104, %103 : vector<96x1xf32>
      %106 = math.absf %105 : vector<96x1xf32>
      %107 = math.sqrt %106 : vector<96x1xf32>
      %cst_72 = arith.constant 5.000000e-01 : f32
      %108 = vector.broadcast %cst_72 : f32 to vector<96x1xf32>
      %109 = arith.mulf %108, %107 : vector<96x1xf32>
      %cst_73 = arith.constant 1.000000e+00 : f32
      %110 = vector.broadcast %cst_73 : f32 to vector<96x1xf32>
      %111 = arith.subf %110, %109 : vector<96x1xf32>
      %112 = arith.divf %109, %111 : vector<96x1xf32>
      %c0_74 = arith.constant 0 : index
      %c0_75 = arith.constant 0 : index
      %113 = vector.load %arg3[%c0_74, %c0_75] : memref<6x128xf32, #tpu.memory_space<vmem>>, vector<6x128xf32>
      %114 = vector.extract_strided_slice %113 {offsets = [0, 0], sizes = [1, 128], strides = [1, 1]} : vector<6x128xf32> to vector<1x128xf32>
      %115 = vector.broadcast %94 : vector<96x1xf32> to vector<96x128xf32>
      %116 = vector.broadcast %114 : vector<1x128xf32> to vector<96x128xf32>
      %117 = arith.mulf %115, %116 : vector<96x128xf32>
      %118 = vector.extract_strided_slice %113 {offsets = [1, 0], sizes = [1, 128], strides = [1, 1]} : vector<6x128xf32> to vector<1x128xf32>
      %119 = vector.broadcast %99 : vector<96x1xf32> to vector<96x128xf32>
      %120 = vector.broadcast %118 : vector<1x128xf32> to vector<96x128xf32>
      %121 = arith.mulf %119, %120 : vector<96x128xf32>
      %122 = arith.addf %117, %121 : vector<96x128xf32>
      %123 = vector.extract_strided_slice %113 {offsets = [2, 0], sizes = [1, 128], strides = [1, 1]} : vector<6x128xf32> to vector<1x128xf32>
      %124 = vector.broadcast %89 : vector<96x1xf32> to vector<96x128xf32>
      %125 = vector.broadcast %123 : vector<1x128xf32> to vector<96x128xf32>
      %126 = arith.mulf %124, %125 : vector<96x128xf32>
      %127 = arith.addf %122, %126 : vector<96x128xf32>
      %128 = vector.extract_strided_slice %113 {offsets = [3, 0], sizes = [1, 128], strides = [1, 1]} : vector<6x128xf32> to vector<1x128xf32>
      %129 = vector.broadcast %100 : vector<96x1xf32> to vector<96x128xf32>
      %130 = vector.broadcast %128 : vector<1x128xf32> to vector<96x128xf32>
      %131 = arith.mulf %129, %130 : vector<96x128xf32>
      %132 = arith.addf %127, %131 : vector<96x128xf32>
      %133 = vector.extract_strided_slice %113 {offsets = [4, 0], sizes = [1, 128], strides = [1, 1]} : vector<6x128xf32> to vector<1x128xf32>
      %134 = vector.broadcast %101 : vector<96x1xf32> to vector<96x128xf32>
      %135 = vector.broadcast %133 : vector<1x128xf32> to vector<96x128xf32>
      %136 = arith.mulf %134, %135 : vector<96x128xf32>
      %137 = arith.addf %132, %136 : vector<96x128xf32>
      %138 = vector.extract_strided_slice %113 {offsets = [5, 0], sizes = [1, 128], strides = [1, 1]} : vector<6x128xf32> to vector<1x128xf32>
      %139 = vector.broadcast %112 : vector<96x1xf32> to vector<96x128xf32>
      %140 = vector.broadcast %138 : vector<1x128xf32> to vector<96x128xf32>
      %141 = arith.mulf %139, %140 : vector<96x128xf32>
      %142 = arith.addf %137, %141 : vector<96x128xf32>
      %c0_76 = arith.constant 0 : index
      %c0_77 = arith.constant 0 : index
      %143 = vector.load %arg4[%c0_76, %c0_77] : memref<1x128xf32, #tpu.memory_space<vmem>>, vector<1x128xf32>
      %144 = vector.broadcast %143 : vector<1x128xf32> to vector<96x128xf32>
      %145 = arith.addf %142, %144 : vector<96x128xf32>
      %cst_78 = arith.constant 0.000000e+00 : f32
      %146 = vector.broadcast %cst_78 : f32 to vector<96x128xf32>
      %147 = arith.maximumf %145, %146 : vector<96x128xf32>
      %c0_79 = arith.constant 0 : index
      %c0_80 = arith.constant 0 : index
      %148 = vector.load %arg5[%c0_79, %c0_80] : memref<1x128xf32, #tpu.memory_space<vmem>>, vector<1x128xf32>
      %149 = vector.broadcast %148 : vector<1x128xf32> to vector<96x128xf32>
      %150 = arith.mulf %147, %149 : vector<96x128xf32>
      %cst_81 = arith.constant dense<0.000000e+00> : vector<96xf32>
      %151 = vector.multi_reduction <add>, %150, %cst_81 [1] : vector<96x128xf32> to vector<96xf32>
      %152 = vector.shape_cast %151 : vector<96xf32> to vector<96x1xf32>
      %c0_82 = arith.constant 0 : index
      %c0_83 = arith.constant 0 : index
      %153 = memref.load %arg6[%c0_82, %c0_83] : memref<1x1xf32, #tpu.memory_space<smem>>
      %154 = vector.broadcast %153 : f32 to vector<96x1xf32>
      %155 = arith.addf %152, %154 : vector<96x1xf32>
      %c0_84 = arith.constant 0 : index
      %c0_85 = arith.constant 0 : index
      %156 = vector.load %arg7[%c0_84, %c0_85] : memref<96x1xf32, #tpu.memory_space<vmem>>, vector<96x1xf32>
      tpu.vector_store %arg7[%c0_84, %c0_85], %155 {strides = array<i32>} : memref<96x1xf32, #tpu.memory_space<vmem>>, vector<96x1xf32>,
    } else {
    }
    return
  }
  func.func @transform_0(%arg0: i32, %arg1: i32) -> (i32, i32) {
    %c0_i32 = arith.constant 0 : i32
    return %arg0, %arg1 : i32, i32
  }
  func.func @transform_1(%arg0: i32, %arg1: i32) -> (i32, i32) {
    %c0_i32 = arith.constant 0 : i32
    %c0_i32_0 = arith.constant 0 : i32
    %c0_i32_1 = arith.constant 0 : i32
    return %c0_i32, %c0_i32_0 : i32, i32
  }
  func.func @transform_2(%arg0: i32, %arg1: i32) -> (i32, i32) {
    %c0_i32 = arith.constant 0 : i32
    %c0_i32_0 = arith.constant 0 : i32
    %c0_i32_1 = arith.constant 0 : i32
    return %c0_i32, %c0_i32_0 : i32, i32
  }
  func.func @transform_3(%arg0: i32, %arg1: i32) -> (i32, i32) {
    %c0_i32 = arith.constant 0 : i32
    %c0_i32_0 = arith.constant 0 : i32
    %c0_i32_1 = arith.constant 0 : i32
    return %c0_i32, %c0_i32_0 : i32, i32
  }
  func.func @transform_4(%arg0: i32, %arg1: i32) -> (i32, i32) {
    %c0_i32 = arith.constant 0 : i32
    %c0_i32_0 = arith.constant 0 : i32
    %c0_i32_1 = arith.constant 0 : i32
    return %c0_i32, %c0_i32_0 : i32, i32
  }
  func.func @transform_5(%arg0: i32, %arg1: i32) -> (i32, i32) {
    %c0_i32 = arith.constant 0 : i32
    %c0_i32_0 = arith.constant 0 : i32
    return %arg0, %c0_i32 : i32, i32
  }
}

</mosaic_0001>

<bundles_post_ra>
// kernel: tpu_custom_call.1
= control target key start
LH: loop header
LB: loop body
LE: loop exit
PB: predicated region body
PF: predicated region fallthrough
CT: control target
= control target key end

     0   :  { %s4031_s0 = inlined_call_operand.hbm [shape: f32[100,600], index: 0, kind: input, shape index: {}]   ;;  %s4032_s1 = inlined_call_operand.hbm [shape: f32[6,128], index: 1, kind: input, shape index: {}]   ;;  %s4033_s2 = inlined_call_operand.vmem [shape: f32[1,128], index: 2, kind: input, shape index: {}]   ;;  %s4034_s3 = inlined_call_operand.vmem [shape: f32[1,128], index: 3, kind: input, shape index: {}]   ;;  %s4035_s4 = inlined_call_operand.<no memory space> [shape: f32[1,1], index: 4, kind: input, shape index: {}]   ;;  %s4036_s5 = inlined_call_operand.vmem [shape: f32[100,1], index: 5, kind: output, shape index: {}]  }
   0x1   :  { %4055 = sst [smem:[#allocation48_spill]] %s4032_s1 }
   0x2   :  { %10 = sst [smem:[#allocation5]] %s4035_s4 }
   0x3   :  { %11 = vsyncpa [#allocation7], 0 }
   0x4   :  { %13 = vsyncpa [#allocation7 + $0x1], 0 }
   0x5   :  { %14 = vsyncpa [#allocation9], 0  ;;  %s2551_s20 = smov 0   ;;  %s2553_s21 = smov 0  }
   0x6   :  { %s2555_s22 = smov 0   ;;  %s2557_s23 = smov 0  }
   0x7   :  { %s2559_s24 = smov 0   ;;  %s2561_s25 = smov 0  }
   0x8   :  { %s2563_s26 = smov 0   ;;  %s2565_s27 = smov 0  }
   0x9   :  { %s2567_s4 = smov 0   ;;  %s2569_s28 = smov 0  }
   0xa LB: > { %4056 = sst [smem:[#allocation13_spill]] %s2447_s21  ;;  %s2038_s29 = sadd.s32 4294967295, %s2479_s28   ;;  %s2479_s28 = sphi %s2569_s28, %s20_s28   ;;  %s2475_s4 = sphi %s2567_s4, %s4168_s4   ;;  %s2471_s27 = sphi %s2565_s27, %s4163_s27   ;;  %s2467_s26 = sphi %s2563_s26, %s4167_s26   ;;  %s2463_s25 = sphi %s2561_s25, %s4162_s25   ;;  %s2459_s24 = sphi %s2559_s24, %s4161_s24   ;;  %s2455_s23 = sphi %s2557_s23, %s4166_s23   ;;  %s2451_s22 = sphi %s2555_s22, %s4165_s22   ;;  %s2447_s21 = sphi %s2553_s21, %s4159_s21   ;;  %s2443_s20 = sphi %s2551_s20, %s4158_s20  }
   0xb   : > { %4057 = sst [smem:[#allocation14_spill]] %s2459_s24  ;;  %s29_s30 = sadd.s32 1, %s2471_s27 }
   0xc   : > { %4058 = sst [smem:[#allocation15_spill]] %s2471_s27  ;;  %p30_p0 = scmp.ge.s32.totalorder %s29_s30, 2 }
   0xd   : > { %s32_s6 = sadd.s32 1, %s2475_s4  ;;  %s41_s7 = sadd.s32 1, %s2459_s24 }
   0xe   : > { %p48_p1 = scmp.ne.s32.totalorder %s2459_s24, %s2455_s23  ;;  %s4170_s30 = smov (%p30_p0, %s29_s30), 0 }
   0xf   : > { %4059 = sst [smem:[#allocation16_spill]] %s4170_s30  ;;  %s4172_s6 = smov (!%p30_p0, %s32_s6), %s2475_s4 }
  0x10   : > { %s37_s8 = ssub.s32 %s2471_s27, %s4170_s30  ;;  %p49_p2 = scmp.eq.s32.totalorder %s2479_s28, 0 }
  0x11   : > { %p34_p3 = scmp.ge.s32.totalorder %s4172_s6, 2  ;;  %p54_p4 = scmp.ne.s32.totalorder %s2455_s23, %s2451_s22 }
  0x12   : > { %p2612_p5 = por %p49_p2, %p48_p1  ;;  %p2616_p6 = scmp.eq.s32.totalorder %s2038_s29, 0 }
  0x13   : > { %s4174_s6 = smov (%p34_p3, %s4172_s6), 0  ;;  %s151_s12 = sadd.s32 1, %s2447_s21 }
  0x14   : > { %4062 = sst [smem:[#allocation17_spill]] %s4174_s6  ;;  %p2624_p7 = por %p2616_p6, %p54_p4 }
  0x15   : > { %s36_s13 = ssub.s32 %s2475_s4, %s4174_s6  ;;  %p161_p8 = scmp.ne.s32.totalorder %s2447_s21, %s2443_s20 }
  0x16   : > { %s4063_s11 = scalar_select %p2624_p7, 1, 0 }
  0x17   : > { %s38_s14 = sor.u32 %s37_s8, %s36_s13  ;;  %p149_p9 = scmp.eq.s32.totalorder %s36_s13, 0 }
  0x18   : > { %p39_p10 = scmp.eq.s32.totalorder %s38_s14, 0  ;;  %p162_p11 = scmp.eq.s32.totalorder %s2038_s29, 3 }
  0x19   : > { %s2634_s15 = scalar_select %p149_p9, %s2447_s21, %s151_s12  }
  0x1a   : > { %s2637_s16 = scalar_select %p39_p10, %s2459_s24, %s41_s7  }
  0x1b   : > { %4064 = sst [smem:[#allocation18_spill]] %s2634_s15  ;;  %p2639_p12 = por %p162_p11, %p161_p8 }
  0x1c   : > { %4065 = sst [smem:[#allocation19_spill]] %s2637_s16  ;;  %p2040_p13 = scmp.ge.s32.totalorder %s2479_s28, 1 }
  0x1d   : > { %s4066_s17 = scalar_select %p2639_p12, 1, 0 }
  0x1e   : > { %p175_p0 = scmp.lt.s32.totalorder %s2479_s28, 5  ;;  %s2513_s19 = smov [#allocation8]  }
  0x1f   : > { %s188_s22 = sshll.u32 %s2513_s19, 4  ;;  %s189_s22 = int_to_ptr.vmem [resolvable:$true] %s188_s22 }
  0x20   : > { %p2645_p1 = pnand %p2040_p13, %p175_p0  ;;  %s2320_s29 = scalar_lea.vmem %s189_s22, 128 }
  0x21   : > { %p2321_p8 = scmp.ne.s32.totalorder %s189_s22, %s2320_s29  ;;  %p2328_p11 = scmp.lt.s32.totalorder %s189_s22, %s189_s22 }
  0x22   : > { %p2077_p2 = pneg %p2645_p1  ;;  %p2329_p12 = scmp.lt.s32.totalorder %s2320_s29, %s2320_s29 }
  0x24   : > { %p2078_p3 = pnand %p2077_p2, %p2616_p6  ;;  %p2330_p7 = por %p2329_p12, %p2328_p11 }
  0x26   : > { %p2311_p4 = pneg %p2078_p3 }
  0x28   : > { %p2323_p9 = pnand %p2321_p8, %p2311_p4 }
  0x2a   : > { %p2324_p10 = pneg %p2323_p9 }
  0x2c   : > { %p2331_p13 = pnand %p2330_p7, %p2324_p10 }
  0x2e   : > { %2334 = shalt.err (!%p2331_p13)
}
  0x2f   : > { %s4068_s1 = sld [smem:[#allocation48_spill]]  ;;  %p2042_p0 = scmp.ge.s32.totalorder %s2479_s28, 4 }
  0x31   : > { %204 = sbr.rel (%p2042_p0) target bundleno = 92 (0x5c), region = 32 }
  0x35   : > { %2080 = dma.hbm_to_vmem [thread:$0]  (!%p2078_p3), %s4068_s1, 128, %s189_s22, [#allocation9]  }
  0x36   : > { %207 = sbr.rel (!%p2612_p5) target bundleno = 92 (0x5c), region = 36  ;;  %s208_s12 = sand.u32 (%p2612_p5), 1, %s2459_s24  }
  0x37   : > { %s213_s13 = smul.u32 (%p2612_p5), 12, %s2475_s4  ;;  %s2043_s19 = sshll.u32 (%p2612_p5), %s2471_s27, 2 }
  0x38   : > { %s2068_s14 = smul.u32 (%p2612_p5), 384, %s208_s12  ;;  %s219_s6 = ssub.s32 (%p2612_p5), 5, %s2043_s19 }
  0x39   : > { %s215_s29 = ssub.s32 (%p2612_p5), 13, %s213_s13  ;;  %p220_p12 = scmp.lt.s32.totalorder (%p2612_p5), %s219_s6, 4 }
  0x3a   : > { %p216_p7 = scmp.lt.s32.totalorder (%p2612_p5), %s215_s29, 12  ;;  %s2668_s8 = scalar_lea.sflag (%p2612_p5), [#allocation7], %s208_s12 }
  0x3b   : > { %s4178_s6 = smov (!%p220_p12, %s219_s6), 4  ;;  %s212_s1 = scalar_lea.vmem [#allocation6], %s2068_s14 }
  0x3c   : > { %s4176_s29 = smov (!%p216_p7, %s215_s29), 12 }
  0x3d   : > { %s2044_s7 = sshll.u32 %s4176_s29, 7 }
  0x3e   : > { %s2665_s22 = smul.u32 %s2044_s7, %s4178_s6 }
  0x40   : > { %s224_s9 = ssub.s32 6144, %s2665_s22 }
  0x41   : > { %225 = vsyncadd %s2668_s8, %s224_s9  ;;  %p2045_p5 = scmp.ne.s32.totalorder %s2665_s22, 0  ;;  %s2082_s13 = smul.u32 60, %s2475_s4 }
  0x42   : > { %s2047_s30 = sshll.u32 %s4178_s6, 3  ;;  %s233_s27 = sshll.u32 %s212_s1, 4  ;;  %s2676_s27 = int_to_ptr.vmem [resolvable:$true] %s233_s27 }
  0x43   : > { %s228_s16 = sadd.s32 %s2082_s13, %s2043_s19  ;;  %s232_s7 = smul.u32 %s2047_s30, %s4176_s29 }
  0x44   : > { %s2046_s24 = sshll.u32 %s228_s16, 7  ;;  %s2339_s16 = scalar_lea.hbm %s4031_s0, 8320 }
  0x45   : > { %s2681_s14 = scalar_lea.hbm %s4031_s0, %s2046_s24  ;;  %s2683_s9 = sshll.u32 %s232_s7, 4 }
  0x46   : > { %s2335_s21 = scalar_lea.hbm %s2681_s14, %s2683_s9 }
  0x47   : > { %p2336_p2 = scmp.ne.s32.totalorder %s2681_s14, %s2335_s21  ;;  %p2341_p8 = scmp.lt.s32.totalorder %s2339_s16, %s2335_s21 }
  0x49   : > { %p2337_p3 = pnand %p2336_p2, %p2045_p5 }
  0x4b   : > { %p2338_p4 = pneg %p2337_p3 }
  0x4d   : > { %p2343_p9 = pnand %p2341_p8, %p2338_p4 }
  0x4f   : > { %2346 = shalt.err (!%p2343_p9)
}
  0x50   : > { %s2347_s24 = scalar_lea.vmem %s2676_s27, %s2683_s9  ;;  %s2514_s15 = smov [#allocation6]  }
  0x51   : > { %p2348_p10 = scmp.ne.s32.totalorder %s2676_s27, %s2347_s24  ;;  %s2351_s29 = sshll.u32 %s2514_s15, 4  ;;  %s2352_s29 = int_to_ptr.vmem [resolvable:$false] %s2351_s29 }
  0x52   : > { %s2353_s13 = scalar_lea.vmem %s2352_s29, 12288  ;;  %p2354_p0 = scmp.lt.s32.totalorder %s2676_s27, %s2352_s29 }
  0x53   : > { %p2349_p11 = pnand %p2348_p10, %p2045_p5  ;;  %p2355_p7 = scmp.lt.s32.totalorder %s2353_s13, %s2347_s24 }
  0x55   : > { %p2350_p13 = pneg %p2349_p11  ;;  %p2356_p12 = por %p2355_p7, %p2354_p0 }
  0x57   : > { %p2357_p2 = pnand %p2356_p12, %p2350_p13 }
  0x59   : > { %2360 = shalt.err (!%p2357_p2)
}
  0x5a   : > { %s2515_s21 = smov 640   ;;  %s2516_s7 = smov 512  }
  0x5b   : > { %239 = dma.hbm_to_vmem [thread:$0]  (%p2045_p5), %s2681_s14, %s2683_s9, %s2676_s27, %s2668_s8, %s2515_s21, %s2516_s7, %s2047_s30  }
  0x5c PF: > { %245 = sbr.rel (%p2645_p1) target bundleno = 718 (0x2ce), region = 40 }
  0x61   : > { %s247_s12 = sand.u32 1, %s2455_s23   ;;  %p4069_p3 = scmp.ne.s32.totalorder %s4063_s11, 0 }
  0x62   : > { %s2070_s1 = smul.u32 384, %s247_s12  ;;  %s248_s19 = scalar_lea.sflag [#allocation7], %s247_s12 }
  0x64   : > { %s2710_s16 = scalar_lea.vmem [#allocation6], %s2070_s1 }
  0x65   : > { %2434 = dma.done.wait (%p4069_p3), %s248_s19, 6144  }
  0x66   : > { %2436 = vsyncadd (%p4069_p3), %s248_s19, 4294961152 }
  0x67   : > { %2438 = dma.done.wait (%p2616_p6), [#allocation9], 128  }
  0x68   : > { %2440 = vsyncadd (%p2616_p6), [#allocation9], 4294967168  ;;  %s278_s27 = sand.u32 1, %s2443_s20   ;;  %p2050_p1 = scmp.ne.s32.totalorder %s2463_s25, 0 }
  0x69   : > { %s2071_s30 = smul.u32 96, %s278_s27 }
  0x6a   : > { %299 = sbr.rel (%p2050_p1) target bundleno = 130 (0x82), region = 52 }
  0x6b   : > { %s2721_s6 = scalar_lea.vmem [#allocation10], %s2071_s30  }
  0x6f   : > { %v2517_v0 = vmov 0.0  }
  0x70   : > { %300 = vst [vmem:[#allocation2 + $0x30] sm:$0xff] %v2517_v0  ;;  %301 = vst [vmem:[#allocation2] sm:$0xff] %v2517_v0 }
  0x71   : > { %302 = vst [vmem:[#allocation2 + $0x58] sm:$0xff] %v2517_v0  ;;  %303 = vst [vmem:[#allocation2 + $0x18] sm:$0xff] %v2517_v0 }
  0x72   : > { %304 = vst [vmem:[#allocation2 + $0x50] sm:$0xff] %v2517_v0  ;;  %305 = vst [vmem:[#allocation2 + $0x20] sm:$0xff] %v2517_v0 }
  0x73   : > { %306 = vst [vmem:[#allocation2 + $0x8] sm:$0xff] %v2517_v0  ;;  %307 = vst [vmem:[#allocation2 + $0x38] sm:$0xff] %v2517_v0 }
  0x74   : > { %308 = vst [vmem:[#allocation2 + $0x28] sm:$0xff] %v2517_v0  ;;  %309 = vst [vmem:[#allocation2 + $0x48] sm:$0xff] %v2517_v0 }
  0x75   : > { %310 = vst [vmem:[#allocation2 + $0x10] sm:$0xff] %v2517_v0  ;;  %311 = vst [vmem:[#allocation2 + $0x40] sm:$0xff] %v2517_v0 }
  0x76   : > { %312 = vst [vmem:[#allocation3 + $0x48] sm:$0xff] %v2517_v0  ;;  %313 = vst [vmem:[#allocation3] sm:$0xff] %v2517_v0 }
  0x77   : > { %314 = vst [vmem:[#allocation3 + $0x50] sm:$0xff] %v2517_v0  ;;  %315 = vst [vmem:[#allocation3 + $0x30] sm:$0xff] %v2517_v0 }
  0x78   : > { %316 = vst [vmem:[#allocation3 + $0x8] sm:$0xff] %v2517_v0  ;;  %317 = vst [vmem:[#allocation3 + $0x20] sm:$0xff] %v2517_v0 }
  0x79   : > { %318 = vst [vmem:[#allocation3 + $0x18] sm:$0xff] %v2517_v0  ;;  %319 = vst [vmem:[#allocation3 + $0x40] sm:$0xff] %v2517_v0 }
  0x7a   : > { %320 = vst [vmem:[#allocation3 + $0x38] sm:$0xff] %v2517_v0  ;;  %321 = vst [vmem:[#allocation3 + $0x28] sm:$0xff] %v2517_v0 }
  0x7b   : > { %322 = vst [vmem:[#allocation3 + $0x58] sm:$0xff] %v2517_v0  ;;  %323 = vst [vmem:[#allocation3 + $0x10] sm:$0xff] %v2517_v0 }
  0x7c   : > { %324 = vst [vmem:[#allocation4 + $0x30] sm:$0xff] %v2517_v0  ;;  %325 = vst [vmem:[#allocation4] sm:$0xff] %v2517_v0 }
  0x7d   : > { %326 = vst [vmem:[#allocation4 + $0x40] sm:$0xff] %v2517_v0  ;;  %327 = vst [vmem:[#allocation4 + $0x58] sm:$0xff] %v2517_v0 }
  0x7e   : > { %328 = vst [vmem:[#allocation4 + $0x8] sm:$0xff] %v2517_v0  ;;  %329 = vst [vmem:[#allocation4 + $0x10] sm:$0xff] %v2517_v0 }
  0x7f   : > { %330 = vst [vmem:[#allocation4 + $0x20] sm:$0xff] %v2517_v0  ;;  %331 = vst [vmem:[#allocation4 + $0x48] sm:$0xff] %v2517_v0 }
  0x80   : > { %332 = vst [vmem:[#allocation4 + $0x38] sm:$0xff] %v2517_v0  ;;  %333 = vst [vmem:[#allocation4 + $0x28] sm:$0xff] %v2517_v0 }
  0x81   : > { %334 = vst [vmem:[#allocation4 + $0x18] sm:$0xff] %v2517_v0  ;;  %335 = vst [vmem:[#allocation4 + $0x50] sm:$0xff] %v2517_v0 }
  0x82 PF: > { %v4043_v1 = vlaneseq  ;;  %s2051_s20 = sshll.u32 %s2463_s25, 9  ;;  %v340_v2 = vld [vmem:[%s2710_s16] sm:$0xff]  ;;  %v390_v8 = vld [vmem:[#allocation2 + $0x30] sm:$0xff]  ;;  %v392_v10 = vld [vmem:[#allocation2 + $0x58] sm:$0xff]  ;;  %p2052_p6 = scmp.ne.s32.totalorder %s2463_s25, 1 }
  0x83   : > { %s339_s10 = ssub.s32 600, %s2051_s20  ;;  %s534_s11 = ssub.s32 472, %s2051_s20  ;;  %v341_v5 = vld [vmem:[%s2710_s16 + $0x20] sm:$0xff]  ;;  %v393_v14 = vld [vmem:[#allocation2 + $0x18] sm:$0xff]  ;;  %v394_v23 = vld [vmem:[#allocation2 + $0x50] sm:$0xff] }
  0x84   : > { %v2727_v3 = vand.u32 127, %v4043_v1  ;;  %v352_v4 = vstv %s339_s10  ;;  %v342_v6 = vld [vmem:[%s2710_s16 + $0x40] sm:$0xff]  ;;  %s717_s18 = ssub.s32 344, %s2051_s20  ;;  %s900_s22 = ssub.s32 216, %s2051_s20  ;;  %v2733_v12 = vstv %s534_s11  ;;  %v396_v29 = vld [vmem:[#allocation2 + $0x8] sm:$0xff]  ;;  %v397_v40 = vld [vmem:[#allocation2 + $0x38] sm:$0xff] }
  0x85   : > { %v343_v7 = vld [vmem:[%s2710_s16 + $0x60] sm:$0xff]  ;;  %v2742_v17 = vstv %s717_s18  ;;  %v2744_v18 = vstv %s900_s22  ;;  %v398_v41 = vld [vmem:[#allocation2 + $0x28] sm:$0xff]  ;;  %v400_v61 = vld [vmem:[#allocation2 + $0x10] sm:$0xff] }
  0x86   : > { %4070 = vst [vmem:[#allocation20_spill] sm:$0xff] %v2727_v3  ;;  %v391_v9 = vld [vmem:[#allocation2] sm:$0xff]  ;;  %vm2736_vm0 = vcmp.lt.s32.totalorder %v2727_v3, %v352_v4  ;;  %4073 = vst [vmem:[#allocation21_spill] sm:$0xff] %v2744_v18  ;;  %v399_v52 = vld [vmem:[#allocation2 + $0x48] sm:$0xff]  ;;  %vm2807_vm1 = vcmp.lt.s32.totalorder %v2727_v3, %v2733_v12  ;;  %vm2938_vm2 = vcmp.lt.s32.totalorder %v2727_v3, %v2742_v17 }
  0x87   : > { %v344_v11 = vld [vmem:[%s2710_s16 + $0x80] sm:$0xff]  ;;  %v354_v19 = vsel %vm2736_vm0, %v340_v2, 0.0  ;;  %v355_v20 = vsel %vm2736_vm0, %v341_v5, 0.0  ;;  %v356_v21 = vsel %vm2736_vm0, %v342_v6, 0.0  ;;  %v357_v22 = vsel %vm2736_vm0, %v343_v7, 0.0  ;;  %v438_v58 = vld [vmem:[#allocation3 + $0x48] sm:$0xff] }
  0x88   : > { %v345_v15 = vld [vmem:[%s2710_s16 + $0xa0] sm:$0xff]  ;;  %v402_v25 = vand.u32 2147483647, %v354_v19  ;;  %v403_v26 = vand.u32 2147483647, %v355_v20  ;;  %v2755_v30 = vmul.f32 %v354_v19, %v354_v19  ;;  %v358_v32 = vsel %vm2736_vm0, %v344_v11, 0.0 }
  0x89   : > { %v346_v16 = vld [vmem:[%s2710_s16 + $0xc0] sm:$0xff]  ;;  %v404_v27 = vand.u32 2147483647, %v356_v21  ;;  %v405_v31 = vand.u32 2147483647, %v357_v22  ;;  %v359_v33 = vsel %vm2736_vm0, %v345_v15, 0.0  ;;  %v370_v19 = vmul.f32 %v358_v32, %v358_v32 }
  0x8a   : > { %v347_v24 = vld [vmem:[%s2710_s16 + $0xe0] sm:$0xff]  ;;  %v360_v34 = vsel %vm2736_vm0, %v346_v16, 0.0  ;;  %v2764_v36 = vadd.f32 %v402_v25, %v390_v8  ;;  %v2766_v37 = vadd.f32 %v403_v26, %v391_v9  ;;  %v406_v39 = vand.u32 2147483647, %v358_v32  ;;  %v440_v15 = vld [vmem:[#allocation3 + $0x50] sm:$0xff] }
  0x8b   : > { %v395_v28 = vld [vmem:[#allocation2 + $0x20] sm:$0xff]  ;;  %v2768_v38 = vadd.f32 %v404_v27, %v392_v10  ;;  %v2771_v43 = vadd.f32 %v405_v31, %v393_v14  ;;  %v407_v44 = vand.u32 2147483647, %v359_v33  ;;  %v408_v45 = vand.u32 2147483647, %v360_v34  ;;  %v441_v16 = vld [vmem:[#allocation3 + $0x30] sm:$0xff] }
  0x8c   : > { %v348_v35 = vld [vmem:[%s2710_s16 + $0x100] sm:$0xff]  ;;  %v361_v46 = vsel %vm2736_vm0, %v347_v24, 0.0  ;;  %v2776_v48 = vadd.f32 %v406_v39, %v394_v23  ;;  %v378_v0 = vmul.f32 %v2755_v30, %v2755_v30  ;;  %v367_v8 = vmul.f32 %v355_v20, %v355_v20  ;;  %v442_v27 = vld [vmem:[#allocation3 + $0x8] sm:$0xff]  ;;  %v444_v31 = vld [vmem:[#allocation3 + $0x18] sm:$0xff] }
  0x8d   : > { %v349_v42 = vld [vmem:[%s2710_s16 + $0x120] sm:$0xff]  ;;  %v409_v49 = vand.u32 2147483647, %v361_v46  ;;  %v362_v50 = vsel %vm2736_vm0, %v348_v35, 0.0  ;;  %v2783_v54 = vadd.f32 %v407_v44, %v395_v28  ;;  %v2785_v55 = vadd.f32 %v408_v45, %v396_v29  ;;  %v479_v18 = vld [vmem:[#allocation4 + $0x10] sm:$0xff] }
  0x8e   : > { %v350_v47 = vld [vmem:[%s2710_s16 + $0x140] sm:$0xff]  ;;  %v363_v51 = vsel %vm2736_vm0, %v349_v42, 0.0  ;;  %v410_v56 = vand.u32 2147483647, %v362_v50  ;;  %v2799_v7 = vadd.f32 %v438_v58, %v378_v0  ;;  %v368_v9 = vmul.f32 %v356_v21, %v356_v21 }
  0x8f   : > { %v351_v53 = vld [vmem:[%s2710_s16 + $0x160] sm:$0xff]  ;;  %v411_v57 = vand.u32 2147483647, %v363_v51  ;;  %v2787_v59 = vadd.f32 %v409_v49, %v397_v40  ;;  %v364_v60 = vsel %vm2736_vm0, %v350_v47, 0.0  ;;  %v369_v10 = vmul.f32 %v357_v22, %v357_v22 }
  0x90   : > { %v365_v62 = vsel %vm2736_vm0, %v351_v53, 0.0  ;;  %v401_v63 = vld [vmem:[#allocation2 + $0x40] sm:$0xff]  ;;  %v2795_v2 = vadd.f32 %v410_v56, %v398_v41  ;;  %v412_v5 = vand.u32 2147483647, %v364_v60  ;;  %v371_v23 = vmul.f32 %v359_v33, %v359_v33  ;;  %v474_v56 = vld [vmem:[#allocation4 + $0x30] sm:$0xff] }
  0x91   : > { %v2797_v4 = vadd.f32 %v411_v57, %v399_v52  ;;  %v413_v6 = vand.u32 2147483647, %v365_v62  ;;  %v439_v13 = vld [vmem:[#allocation3] sm:$0xff]  ;;  %v379_v24 = vmul.f32 %v367_v8, %v367_v8  ;;  %v380_v25 = vmul.f32 %v368_v9, %v368_v9 }
  0x92   : > { %v2801_v11 = vadd.f32 %v412_v5, %v400_v61  ;;  %v381_v26 = vmul.f32 %v369_v10, %v369_v10  ;;  %v443_v28 = vld [vmem:[#allocation3 + $0x20] sm:$0xff]  ;;  %v372_v29 = vmul.f32 %v360_v34, %v360_v34  ;;  %v382_v21 = vmul.f32 %v370_v19, %v370_v19  ;;  %v446_v34 = vld [vmem:[#allocation3 + $0x38] sm:$0xff]  ;;  %v449_v5 = vld [vmem:[#allocation3 + $0x10] sm:$0xff] }
  0x93   : > { %v2803_v14 = vadd.f32 %v413_v6, %v401_v63  ;;  %v383_v22 = vmul.f32 %v371_v23, %v371_v23  ;;  %v373_v35 = vmul.f32 %v361_v46, %v361_v46  ;;  %v374_v39 = vmul.f32 %v362_v50, %v362_v50  ;;  %v445_v42 = vld [vmem:[#allocation3 + $0x40] sm:$0xff]  ;;  %v447_v46 = vld [vmem:[#allocation3 + $0x28] sm:$0xff]  ;;  %v448_v63 = vld [vmem:[#allocation3 + $0x58] sm:$0xff] }
  0x94   : > { %v2811_v40 = vadd.f32 %v439_v13, %v379_v24  ;;  %v2813_v32 = vadd.f32 %v440_v15, %v380_v25  ;;  %v2815_v33 = vadd.f32 %v441_v16, %v381_v26  ;;  %v384_v41 = vmul.f32 %v372_v29, %v372_v29  ;;  %v475_v57 = vld [vmem:[#allocation4] sm:$0xff] }
  0x95   : > { %v2817_v44 = vadd.f32 %v442_v27, %v382_v21  ;;  %v2819_v12 = vadd.f32 %v443_v28, %v383_v22  ;;  %v385_v45 = vmul.f32 %v373_v35, %v373_v35  ;;  %v386_v47 = vmul.f32 %v374_v39, %v374_v39  ;;  %v476_v15 = vld [vmem:[#allocation4 + $0x40] sm:$0xff] }
  0x96   : > { %v2821_v49 = vadd.f32 %v444_v31, %v384_v41  ;;  %v375_v52 = vmul.f32 %v363_v51, %v363_v51  ;;  %v376_v50 = vmul.f32 %v364_v60, %v364_v60  ;;  %v377_v53 = vmul.f32 %v365_v62, %v365_v62  ;;  %v477_v31 = vld [vmem:[#allocation4 + $0x58] sm:$0xff]  ;;  %v478_v60 = vld [vmem:[#allocation4 + $0x8] sm:$0xff] }
  0x97   : > { %v2823_v58 = vadd.f32 %v445_v42, %v385_v45  ;;  %v2825_v61 = vadd.f32 %v446_v34, %v386_v47  ;;  %v486_v6 = vmul.f32 %v378_v0, %v2755_v30  ;;  %v487_v13 = vmul.f32 %v379_v24, %v367_v8  ;;  %v480_v8 = vld [vmem:[#allocation4 + $0x20] sm:$0xff]  ;;  %v522_v24 = vld [vmem:[%s2710_s16 + $0x8] sm:$0xff] }
  0x98   : > { %v387_v16 = vmul.f32 %v375_v52, %v375_v52  ;;  %v388_v27 = vmul.f32 %v376_v50, %v376_v50  ;;  %v389_v28 = vmul.f32 %v377_v53, %v377_v53  ;;  %v488_v51 = vmul.f32 %v380_v25, %v368_v9  ;;  %v481_v9 = vld [vmem:[#allocation4 + $0x48] sm:$0xff] }
  0x99   : > { %4076 = vst [vmem:[#allocation22_spill] sm:$0xff] %v2823_v58  ;;  %4077 = vst [vmem:[#allocation23_spill] sm:$0xff] %v2825_v61  ;;  %v2828_v62 = vadd.f32 %v486_v6, %v474_v56  ;;  %v2830_v1 = vadd.f32 %v487_v13, %v475_v57  ;;  %v489_v42 = vmul.f32 %v381_v26, %v369_v10  ;;  %v482_v26 = vld [vmem:[#allocation4 + $0x38] sm:$0xff]  ;;  %v485_v13 = vld [vmem:[#allocation4 + $0x50] sm:$0xff] }
  0x9a   : > { %v490_v34 = vmul.f32 %v382_v21, %v370_v19  ;;  %v2832_v61 = vadd.f32 %v447_v46, %v387_v16  ;;  %v2834_v58 = vadd.f32 %v448_v63, %v388_v27  ;;  %v2836_v30 = vadd.f32 %v449_v5, %v389_v28  ;;  %v483_v21 = vld [vmem:[#allocation4 + $0x28] sm:$0xff]  ;;  %v484_v46 = vld [vmem:[#allocation4 + $0x18] sm:$0xff] }
  0x9b   : > { %v2838_v0 = vadd.f32 %v488_v51, %v476_v15  ;;  %v2841_v25 = vadd.f32 %v489_v42, %v477_v31  ;;  %v491_v10 = vmul.f32 %v383_v22, %v371_v23  ;;  %v492_v19 = vmul.f32 %v384_v41, %v372_v29  ;;  %v523_v15 = vld [vmem:[%s2710_s16 + $0x28] sm:$0xff] }
  0x9c   : > { %v2843_v56 = vadd.f32 %v490_v34, %v478_v60  ;;  %v493_v57 = vmul.f32 %v385_v45, %v373_v35  ;;  %v494_v63 = vmul.f32 %v386_v47, %v374_v39  ;;  %v495_v5 = vmul.f32 %v387_v16, %v375_v52  ;;  %v524_v51 = vld [vmem:[%s2710_s16 + $0x48] sm:$0xff] }
  0x9d   : > { %v496_v6 = vmul.f32 %v388_v27, %v376_v50  ;;  %v2847_v31 = vadd.f32 %v491_v10, %v479_v18  ;;  %v2849_v60 = vadd.f32 %v492_v19, %v480_v8  ;;  %v497_v23 = vmul.f32 %v389_v28, %v377_v53  ;;  %v525_v22 = vld [vmem:[%s2710_s16 + $0x68] sm:$0xff] }
  0x9e   : > { %v537_v29 = vsel %vm2807_vm1, %v522_v24, 0.0  ;;  %v526_v35 = vld [vmem:[%s2710_s16 + $0x88] sm:$0xff]  ;;  %v2855_v39 = vadd.f32 %v493_v57, %v481_v9  ;;  %v2857_v41 = vadd.f32 %v494_v63, %v482_v26  ;;  %v2859_v45 = vadd.f32 %v495_v5, %v483_v21 }
  0x9f   : > { %v2861_v47 = vadd.f32 %v496_v6, %v484_v46  ;;  %v527_v18 = vld [vmem:[%s2710_s16 + $0xa8] sm:$0xff]  ;;  %v2865_v50 = vadd.f32 %v497_v23, %v485_v13  ;;  %v585_v16 = vand.u32 2147483647, %v537_v29  ;;  %v538_v53 = vsel %vm2807_vm1, %v523_v15, 0.0 }
  0xa0   : > { %v528_v52 = vld [vmem:[%s2710_s16 + $0xc8] sm:$0xff]  ;;  %v539_v27 = vsel %vm2807_vm1, %v524_v51, 0.0  ;;  %v586_v34 = vand.u32 2147483647, %v538_v53  ;;  %v540_v9 = vsel %vm2807_vm1, %v525_v22, 0.0  ;;  %v541_v24 = vsel %vm2807_vm1, %v526_v35, 0.0 }
  0xa1   : > { %v529_v28 = vld [vmem:[%s2710_s16 + $0xe8] sm:$0xff]  ;;  %v587_v8 = vand.u32 2147483647, %v539_v27  ;;  %v2878_v10 = vadd.f32 %v585_v16, %v2764_v36  ;;  %v588_v19 = vand.u32 2147483647, %v540_v9  ;;  %v542_v21 = vsel %vm2807_vm1, %v527_v18, 0.0 }
  0xa2   : > { %v530_v42 = vld [vmem:[%s2710_s16 + $0x108] sm:$0xff]  ;;  %v589_v26 = vand.u32 2147483647, %v541_v24  ;;  %v2884_v57 = vadd.f32 %v586_v34, %v2766_v37  ;;  %v590_v5 = vand.u32 2147483647, %v542_v21  ;;  %v543_v6 = vsel %vm2807_vm1, %v528_v52, 0.0 }
  0xa3   : > { %v531_v46 = vld [vmem:[%s2710_s16 + $0x128] sm:$0xff]  ;;  %v2887_v63 = vadd.f32 %v587_v8, %v2768_v38  ;;  %v2893_v36 = vadd.f32 %v588_v19, %v2771_v43  ;;  %v591_v51 = vand.u32 2147483647, %v543_v6  ;;  %v544_v23 = vsel %vm2807_vm1, %v529_v28, 0.0 }
  0xa4   : > { %v532_v13 = vld [vmem:[%s2710_s16 + $0x148] sm:$0xff]  ;;  %v2896_v15 = vadd.f32 %v589_v26, %v2776_v48  ;;  %v2902_v22 = vadd.f32 %v590_v5, %v2783_v54  ;;  %v592_v38 = vand.u32 2147483647, %v544_v23  ;;  %v545_v35 = vsel %vm2807_vm1, %v530_v42, 0.0 }
  0xa5   : > { %v533_v37 = vld [vmem:[%s2710_s16 + $0x168] sm:$0xff]  ;;  %v546_v18 = vsel %vm2807_vm1, %v531_v46, 0.0  ;;  %v2909_v43 = vadd.f32 %v591_v51, %v2785_v55  ;;  %v593_v48 = vand.u32 2147483647, %v545_v35  ;;  %v547_v16 = vsel %vm2807_vm1, %v532_v13, 0.0 }
  0xa6   : > { %v594_v52 = vand.u32 2147483647, %v546_v18  ;;  %v2914_v28 = vadd.f32 %v592_v38, %v2787_v59  ;;  %v595_v54 = vand.u32 2147483647, %v547_v16  ;;  %v548_v34 = vsel %vm2807_vm1, %v533_v37, 0.0 }
  0xa7   : > { %v549_v8 = vmul.f32 %v537_v29, %v537_v29  ;;  %v2919_v42 = vadd.f32 %v593_v48, %v2795_v2  ;;  %v596_v55 = vand.u32 2147483647, %v548_v34  ;;  %v550_v26 = vmul.f32 %v538_v53, %v538_v53 }
  0xa8   : > { %v2922_v19 = vadd.f32 %v594_v52, %v2797_v4  ;;  %v2925_v46 = vadd.f32 %v595_v54, %v2801_v11  ;;  %v551_v13 = vmul.f32 %v539_v27, %v539_v27  ;;  %v552_v59 = vmul.f32 %v540_v9, %v540_v9 }
  0xa9   : > { %v561_v5 = vmul.f32 %v549_v8, %v549_v8  ;;  %v2928_v51 = vadd.f32 %v596_v55, %v2803_v14  ;;  %v562_v20 = vmul.f32 %v550_v26, %v550_v26  ;;  %v553_v37 = vmul.f32 %v541_v24, %v541_v24 }
  0xaa   : > { %v554_v29 = vmul.f32 %v542_v21, %v542_v21  ;;  %v563_v38 = vmul.f32 %v551_v13, %v551_v13  ;;  %v564_v4 = vmul.f32 %v552_v59, %v552_v59  ;;  %v555_v48 = vmul.f32 %v543_v6, %v543_v6 }
  0xab   : > { %v2931_v2 = vadd.f32 %v561_v5, %v2799_v7  ;;  %v2934_v53 = vadd.f32 %v562_v20, %v2811_v40  ;;  %v565_v11 = vmul.f32 %v553_v37, %v553_v37  ;;  %v556_v54 = vmul.f32 %v544_v23, %v544_v23 }
  0xac   : > { %v566_v52 = vmul.f32 %v554_v29, %v554_v29  ;;  %v2943_v27 = vadd.f32 %v563_v38, %v2813_v32  ;;  %v2946_v7 = vadd.f32 %v564_v4, %v2815_v33  ;;  %v567_v9 = vmul.f32 %v555_v48, %v555_v48 }
  0xad   : > { %4078 = vst [vmem:[#allocation24_spill] sm:$0xff] %v2931_v2  ;;  %4079 = vst [vmem:[#allocation25_spill] sm:$0xff] %v2934_v53  ;;  %v557_v24 = vmul.f32 %v545_v35, %v545_v35  ;;  %v2949_v40 = vadd.f32 %v565_v11, %v2817_v44  ;;  %v568_v6 = vmul.f32 %v556_v54, %v556_v54  ;;  %v4087_v2 = vld [vmem:[#allocation23_spill] sm:$0xff] }
  0xae   : > { %4082 = vst [vmem:[#allocation26_spill] sm:$0xff] %v2943_v27  ;;  %4083 = vst [vmem:[#allocation27_spill] sm:$0xff] %v2946_v7  ;;  %v2952_v21 = vadd.f32 %v566_v52, %v2819_v12  ;;  %v558_v23 = vmul.f32 %v546_v18, %v546_v18  ;;  %v2955_v17 = vadd.f32 %v567_v9, %v2821_v49  ;;  %v4086_v27 = vld [vmem:[#allocation22_spill] sm:$0xff] }
  0xaf   : > { %4084 = vst [vmem:[#allocation28_spill] sm:$0xff] %v2949_v40  ;;  %v569_v55 = vmul.f32 %v557_v24, %v557_v24  ;;  %v559_v3 = vmul.f32 %v547_v16, %v547_v16  ;;  %v560_v32 = vmul.f32 %v548_v34, %v548_v34  ;;  %v2958_v53 = vadd.f32 %v568_v6, %v4086_v27  ;;  %v711_v27 = vld [vmem:[%s2710_s16 + $0xd0] sm:$0xff] }
  0xb0   : > { %4085 = vst [vmem:[#allocation29_spill] sm:$0xff] %v2952_v21  ;;  %v570_v33 = vmul.f32 %v558_v23, %v558_v23  ;;  %v669_v7 = vmul.f32 %v561_v5, %v549_v8  ;;  %v670_v35 = vmul.f32 %v562_v20, %v550_v26  ;;  %v671_v40 = vmul.f32 %v563_v38, %v551_v13 }
  0xb1   : > { %v2961_v44 = vadd.f32 %v569_v55, %v4087_v2  ;;  %v571_v12 = vmul.f32 %v559_v3, %v559_v3  ;;  %v572_v21 = vmul.f32 %v560_v32, %v560_v32  ;;  %v672_v34 = vmul.f32 %v564_v4, %v552_v59  ;;  %v705_v2 = vld [vmem:[%s2710_s16 + $0x10] sm:$0xff] }
  0xb2   : > { %v2964_v18 = vadd.f32 %v570_v33, %v2832_v61  ;;  %v2967_v49 = vadd.f32 %v669_v7, %v2828_v62  ;;  %v2970_v16 = vadd.f32 %v670_v35, %v2830_v1  ;;  %v2979_v5 = vadd.f32 %v671_v40, %v2838_v0  ;;  %v706_v0 = vld [vmem:[%s2710_s16 + $0x30] sm:$0xff] }
  0xb3   : > { %v2973_v8 = vadd.f32 %v571_v12, %v2834_v58  ;;  %v2976_v26 = vadd.f32 %v572_v21, %v2836_v30  ;;  %v673_v61 = vmul.f32 %v565_v11, %v553_v37  ;;  %v2982_v62 = vadd.f32 %v672_v34, %v2841_v25  ;;  %v707_v4 = vld [vmem:[%s2710_s16 + $0x50] sm:$0xff] }
  0xb4   : > { %v674_v13 = vmul.f32 %v566_v52, %v554_v29  ;;  %v675_v1 = vmul.f32 %v567_v9, %v555_v48  ;;  %v676_v20 = vmul.f32 %v568_v6, %v556_v54  ;;  %v677_v58 = vmul.f32 %v569_v55, %v557_v24  ;;  %v708_v48 = vld [vmem:[%s2710_s16 + $0x70] sm:$0xff] }
  0xb5   : > { %v2986_v59 = vadd.f32 %v673_v61, %v2843_v56  ;;  %v678_v30 = vmul.f32 %v570_v33, %v558_v23  ;;  %v679_v38 = vmul.f32 %v571_v12, %v559_v3  ;;  %v680_v56 = vmul.f32 %v572_v21, %v560_v32  ;;  %v709_v11 = vld [vmem:[%s2710_s16 + $0x90] sm:$0xff] }
  0xb6   : > { %v2991_v37 = vadd.f32 %v674_v13, %v2847_v31  ;;  %v2994_v25 = vadd.f32 %v675_v1, %v2849_v60  ;;  %v2997_v29 = vadd.f32 %v676_v20, %v2855_v39  ;;  %v3002_v52 = vadd.f32 %v677_v58, %v2857_v41  ;;  %v710_v54 = vld [vmem:[%s2710_s16 + $0xb0] sm:$0xff] }
  0xb7   : > { %v3005_v3 = vadd.f32 %v678_v30, %v2859_v45  ;;  %v3008_v31 = vadd.f32 %v679_v38, %v2861_v47  ;;  %v720_v60 = vsel %vm2938_vm2, %v705_v2, 0.0  ;;  %v3015_v39 = vadd.f32 %v680_v56, %v2865_v50  ;;  %v712_v9 = vld [vmem:[%s2710_s16 + $0xf0] sm:$0xff] }
  0xb8   : > { %v768_v7 = vand.u32 2147483647, %v720_v60  ;;  %v721_v41 = vsel %vm2938_vm2, %v706_v0, 0.0  ;;  %v722_v45 = vsel %vm2938_vm2, %v707_v4, 0.0  ;;  %v713_v47 = vld [vmem:[%s2710_s16 + $0x110] sm:$0xff]  ;;  %v723_v21 = vsel %vm2938_vm2, %v708_v48, 0.0 }
  0xb9   : > { %v769_v24 = vand.u32 2147483647, %v721_v41  ;;  %v770_v40 = vand.u32 2147483647, %v722_v45  ;;  %v724_v50 = vsel %vm2938_vm2, %v709_v11, 0.0  ;;  %v725_v32 = vsel %vm2938_vm2, %v710_v54, 0.0 }
  0xba   : > { %v3028_v6 = vadd.f32 %v768_v7, %v2878_v10  ;;  %v771_v23 = vand.u32 2147483647, %v723_v21  ;;  %v772_v55 = vand.u32 2147483647, %v724_v50  ;;  %v714_v33 = vld [vmem:[%s2710_s16 + $0x130] sm:$0xff]  ;;  %v726_v61 = vsel %vm2938_vm2, %v711_v27, 0.0 }
  0xbb   : > { %v3034_v35 = vadd.f32 %v769_v24, %v2884_v57  ;;  %v3037_v12 = vadd.f32 %v770_v40, %v2887_v63  ;;  %v773_v34 = vand.u32 2147483647, %v725_v32  ;;  %v715_v13 = vld [vmem:[%s2710_s16 + $0x150] sm:$0xff]  ;;  %v774_v20 = vand.u32 2147483647, %v726_v61 }
  0xbc   : > { %v3043_v10 = vadd.f32 %v771_v23, %v2893_v36  ;;  %v3046_v1 = vadd.f32 %v772_v55, %v2896_v15  ;;  %v727_v2 = vsel %vm2938_vm2, %v712_v9, 0.0  ;;  %v716_v57 = vld [vmem:[%s2710_s16 + $0x170] sm:$0xff]  ;;  %v728_v30 = vsel %vm2938_vm2, %v713_v47, 0.0  ;;  %v4088_v55 = vld [vmem:[#allocation24_spill] sm:$0xff] }
  0xbd   : > { %v3052_v58 = vadd.f32 %v773_v34, %v2902_v22  ;;  %v775_v63 = vand.u32 2147483647, %v727_v2  ;;  %v729_v38 = vsel %vm2938_vm2, %v714_v33, 0.0  ;;  %v3059_v36 = vadd.f32 %v774_v20, %v2909_v43 }
  0xbe   : > { %v776_v15 = vand.u32 2147483647, %v728_v30  ;;  %v777_v0 = vand.u32 2147483647, %v729_v38  ;;  %v730_v4 = vsel %vm2938_vm2, %v715_v13, 0.0  ;;  %v731_v48 = vsel %vm2938_vm2, %v716_v57, 0.0 }
  0xbf   : > { %v3064_v56 = vadd.f32 %v775_v63, %v2914_v28  ;;  %v778_v22 = vand.u32 2147483647, %v730_v4  ;;  %v732_v11 = vmul.f32 %v720_v60, %v720_v60  ;;  %v779_v43 = vand.u32 2147483647, %v731_v48  ;;  %v4090_v13 = vld [vmem:[#allocation25_spill] sm:$0xff]  ;;  %v4098_v63 = vld [vmem:[#allocation27_spill] sm:$0xff] }
  0xc0   : > { %v3069_v54 = vadd.f32 %v776_v15, %v2919_v42  ;;  %v3072_v27 = vadd.f32 %v777_v0, %v2922_v19  ;;  %v733_v7 = vmul.f32 %v721_v41, %v721_v41  ;;  %v734_v24 = vmul.f32 %v722_v45, %v722_v45  ;;  %v4092_v45 = vld [vmem:[#allocation21_spill] sm:$0xff] }
  0xc1   : > { %v3075_v9 = vadd.f32 %v778_v22, %v2925_v46  ;;  %v744_v47 = vmul.f32 %v732_v11, %v732_v11  ;;  %v735_v28 = vmul.f32 %v723_v21, %v723_v21  ;;  %v3078_v40 = vadd.f32 %v779_v43, %v2928_v51  ;;  %v4093_v21 = vld [vmem:[#allocation20_spill] sm:$0xff] }
  0xc2   : > { %v745_v14 = vmul.f32 %v733_v7, %v733_v7  ;;  %v736_v23 = vmul.f32 %v724_v50, %v724_v50  ;;  %v737_v60 = vmul.f32 %v725_v32, %v725_v32  ;;  %v746_v33 = vmul.f32 %v734_v24, %v734_v24  ;;  %v4096_v50 = vld [vmem:[#allocation26_spill] sm:$0xff]  ;;  %v4100_v22 = vld [vmem:[#allocation28_spill] sm:$0xff] }
  0xc3   : > { %v3081_v42 = vadd.f32 %v744_v47, %v4088_v55  ;;  %v747_v19 = vmul.f32 %v735_v28, %v735_v28  ;;  %v738_v34 = vmul.f32 %v726_v61, %v726_v61  ;;  %v739_v57 = vmul.f32 %v727_v2, %v727_v2  ;;  %v4102_v55 = vld [vmem:[#allocation29_spill] sm:$0xff] }
  0xc4   : > { %v3084_v41 = vadd.f32 %v745_v14, %v4090_v13  ;;  %v748_v46 = vmul.f32 %v736_v23, %v736_v23  ;;  %v749_v20 = vmul.f32 %v737_v60, %v737_v60  ;;  %vm3088_vm3 = vcmp.lt.s32.totalorder %v4093_v21, %v4092_v45 }
  0xc5   : > { %4089 = vst [vmem:[#allocation22_spill] sm:$0xff] %v3081_v42  ;;  %v3093_v32 = vadd.f32 %v746_v33, %v4096_v50  ;;  %v3096_v15 = vadd.f32 %v747_v19, %v4098_v63  ;;  %v750_v0 = vmul.f32 %v738_v34, %v738_v34  ;;  %v740_v61 = vmul.f32 %v728_v30, %v728_v30 }
  0xc6   : > { %4091 = vst [vmem:[#allocation23_spill] sm:$0xff] %v3084_v41  ;;  %v3099_v43 = vadd.f32 %v748_v46, %v4100_v22  ;;  %v3102_v13 = vadd.f32 %v749_v20, %v4102_v55  ;;  %v751_v2 = vmul.f32 %v739_v57, %v739_v57  ;;  %v741_v41 = vmul.f32 %v729_v38, %v729_v38 }
  0xc7   : > { %4097 = vst [vmem:[#allocation24_spill] sm:$0xff] %v3093_v32  ;;  %4099 = vst [vmem:[#allocation25_spill] sm:$0xff] %v3096_v15  ;;  %v3105_v45 = vadd.f32 %v750_v0, %v2955_v17  ;;  %v752_v21 = vmul.f32 %v740_v61, %v740_v61  ;;  %v742_v42 = vmul.f32 %v730_v4, %v730_v4 }
  0xc8   : > { %4101 = vst [vmem:[#allocation21_spill] sm:$0xff] %v3099_v43  ;;  %4103 = vst [vmem:[#allocation20_spill] sm:$0xff] %v3102_v13  ;;  %v743_v50 = vmul.f32 %v731_v48, %v731_v48  ;;  %v3108_v32 = vadd.f32 %v751_v2, %v2958_v53  ;;  %v753_v63 = vmul.f32 %v741_v41, %v741_v41 }
  0xc9   : > { %v852_v15 = vmul.f32 %v744_v47, %v732_v11  ;;  %v853_v30 = vmul.f32 %v745_v14, %v733_v7  ;;  %v3111_v22 = vadd.f32 %v752_v21, %v2961_v44  ;;  %v754_v55 = vmul.f32 %v742_v42, %v742_v42 }
  0xca   : > { %v755_v13 = vmul.f32 %v743_v50, %v743_v50  ;;  %v854_v43 = vmul.f32 %v746_v33, %v734_v24  ;;  %v3114_v38 = vadd.f32 %v753_v63, %v2964_v18  ;;  %v855_v4 = vmul.f32 %v747_v19, %v735_v28  ;;  %v888_v24 = vld [vmem:[%s2710_s16 + $0x18] sm:$0xff] }
  0xcb   : > { %v3117_v17 = vadd.f32 %v852_v15, %v2967_v49  ;;  %v3120_v53 = vadd.f32 %v853_v30, %v2970_v16  ;;  %v3123_v48 = vadd.f32 %v754_v55, %v2973_v8  ;;  %v856_v18 = vmul.f32 %v748_v46, %v736_v23  ;;  %v890_v33 = vld [vmem:[%s2710_s16 + $0x58] sm:$0xff] }
  0xcc   : > { %v3126_v44 = vadd.f32 %v755_v13, %v2976_v26  ;;  %v3129_v11 = vadd.f32 %v854_v43, %v2979_v5  ;;  %v3132_v49 = vadd.f32 %v855_v4, %v2982_v62  ;;  %v857_v7 = vmul.f32 %v749_v20, %v737_v60  ;;  %v889_v5 = vld [vmem:[%s2710_s16 + $0x38] sm:$0xff] }
  0xcd   : > { %v858_v16 = vmul.f32 %v750_v0, %v738_v34  ;;  %v859_v47 = vmul.f32 %v751_v2, %v739_v57  ;;  %v3136_v28 = vadd.f32 %v856_v18, %v2986_v59  ;;  %v860_v8 = vmul.f32 %v752_v21, %v740_v61  ;;  %v891_v19 = vld [vmem:[%s2710_s16 + $0x78] sm:$0xff] }
  0xce   : > { %v861_v26 = vmul.f32 %v753_v63, %v741_v41  ;;  %v862_v14 = vmul.f32 %v754_v55, %v742_v42  ;;  %v3141_v23 = vadd.f32 %v857_v7, %v2991_v37  ;;  %v863_v59 = vmul.f32 %v755_v13, %v743_v50  ;;  %v892_v34 = vld [vmem:[%s2710_s16 + $0x98] sm:$0xff] }
  0xcf   : > { %v3144_v62 = vadd.f32 %v858_v16, %v2994_v25  ;;  %v3147_v60 = vadd.f32 %v859_v47, %v2997_v29  ;;  %v3152_v46 = vadd.f32 %v860_v8, %v3002_v52  ;;  %v903_v25 = vsel %vm3088_vm3, %v888_v24, 0.0  ;;  %v893_v41 = vld [vmem:[%s2710_s16 + $0xb8] sm:$0xff] }
  0xd0   : > { %v3155_v42 = vadd.f32 %v861_v26, %v3005_v3  ;;  %v3158_v37 = vadd.f32 %v862_v14, %v3008_v31  ;;  %v894_v20 = vld [vmem:[%s2710_s16 + $0xd8] sm:$0xff]  ;;  %v3165_v29 = vadd.f32 %v863_v59, %v3015_v39  ;;  %v951_v57 = vand.u32 2147483647, %v903_v25 }
  0xd1   : > { %v904_v52 = vsel %vm3088_vm3, %v889_v5, 0.0  ;;  %v905_v3 = vsel %vm3088_vm3, %v890_v33, 0.0  ;;  %v895_v15 = vld [vmem:[%s2710_s16 + $0xf8] sm:$0xff]  ;;  %v906_v43 = vsel %vm3088_vm3, %v891_v19, 0.0  ;;  %v907_v13 = vsel %vm3088_vm3, %v892_v34, 0.0 }
  0xd2   : > { %v896_v31 = vld [vmem:[%s2710_s16 + $0x118] sm:$0xff]  ;;  %v952_v0 = vand.u32 2147483647, %v904_v52  ;;  %v953_v61 = vand.u32 2147483647, %v905_v3  ;;  %v963_v39 = vadd.f32 %v951_v57, %v3028_v6  ;;  %v908_v50 = vsel %vm3088_vm3, %v893_v41, 0.0 }
  0xd3   : > { %v954_v2 = vand.u32 2147483647, %v906_v43  ;;  %v955_v21 = vand.u32 2147483647, %v907_v13  ;;  %v897_v63 = vld [vmem:[%s2710_s16 + $0x138] sm:$0xff]  ;;  %v909_v18 = vsel %vm3088_vm3, %v894_v20, 0.0  ;;  %v915_v34 = vmul.f32 %v903_v25, %v903_v25 }
  0xd4   : > { %v964_v30 = vadd.f32 %v952_v0, %v3034_v35  ;;  %v965_v55 = vadd.f32 %v953_v61, %v3037_v12  ;;  %v956_v4 = vand.u32 2147483647, %v908_v50  ;;  %v898_v7 = vld [vmem:[%s2710_s16 + $0x158] sm:$0xff]  ;;  %975 = vst [vmem:[#allocation2 + $0x30] sm:$0xff] %v963_v39  ;;  %v957_v47 = vand.u32 2147483647, %v909_v18 }
  0xd5   : > { %v966_v16 = vadd.f32 %v954_v2, %v3043_v10  ;;  %v967_v6 = vadd.f32 %v955_v21, %v3046_v1  ;;  %v910_v24 = vsel %vm3088_vm3, %v895_v15, 0.0  ;;  %v899_v8 = vld [vmem:[%s2710_s16 + $0x178] sm:$0xff]  ;;  %v911_v26 = vsel %vm3088_vm3, %v896_v31, 0.0 }
  0xd6   : > { %976 = vst [vmem:[#allocation2] sm:$0xff] %v964_v30  ;;  %977 = vst [vmem:[#allocation2 + $0x58] sm:$0xff] %v965_v55  ;;  %v968_v35 = vadd.f32 %v956_v4, %v3052_v58  ;;  %v958_v12 = vand.u32 2147483647, %v910_v24  ;;  %v912_v14 = vsel %vm3088_vm3, %v897_v63, 0.0  ;;  %v969_v10 = vadd.f32 %v957_v47, %v3059_v36  ;;  %v4104_v2 = vld [vmem:[#allocation22_spill] sm:$0xff] }
  0xd7   : > { %978 = vst [vmem:[#allocation2 + $0x18] sm:$0xff] %v966_v16  ;;  %979 = vst [vmem:[#allocation2 + $0x50] sm:$0xff] %v967_v6  ;;  %v959_v1 = vand.u32 2147483647, %v911_v26  ;;  %v960_v5 = vand.u32 2147483647, %v912_v14  ;;  %v916_v36 = vmul.f32 %v904_v52, %v904_v52  ;;  %v927_v31 = vmul.f32 %v915_v34, %v915_v34 }
  0xd8   : > { %v913_v33 = vsel %vm3088_vm3, %v898_v7, 0.0  ;;  %980 = vst [vmem:[#allocation2 + $0x20] sm:$0xff] %v968_v35  ;;  %v970_v59 = vadd.f32 %v958_v12, %v3064_v56  ;;  %v914_v19 = vsel %vm3088_vm3, %v899_v8, 0.0  ;;  %981 = vst [vmem:[#allocation2 + $0x8] sm:$0xff] %v969_v10  ;;  %v917_v0 = vmul.f32 %v905_v3, %v905_v3  ;;  %v4105_v52 = vld [vmem:[#allocation23_spill] sm:$0xff]  ;;  %v4107_v7 = vld [vmem:[#allocation25_spill] sm:$0xff] }
  0xd9   : > { %v961_v58 = vand.u32 2147483647, %v913_v33  ;;  %v971_v41 = vadd.f32 %v959_v1, %v3069_v54  ;;  %v972_v20 = vadd.f32 %v960_v5, %v3072_v27  ;;  %v962_v57 = vand.u32 2147483647, %v914_v19  ;;  %v4109_v47 = vld [vmem:[#allocation20_spill] sm:$0xff] }
  0xda   : > { %982 = vst [vmem:[#allocation2 + $0x38] sm:$0xff] %v970_v59  ;;  %v918_v61 = vmul.f32 %v906_v43, %v906_v43  ;;  %v928_v51 = vmul.f32 %v916_v36, %v916_v36  ;;  %v919_v39 = vmul.f32 %v907_v13, %v907_v13  ;;  %v920_v25 = vmul.f32 %v908_v50, %v908_v50  ;;  %v4106_v43 = vld [vmem:[#allocation24_spill] sm:$0xff]  ;;  %v4108_v50 = vld [vmem:[#allocation21_spill] sm:$0xff] }
  0xdb   : > { %v973_v15 = vadd.f32 %v961_v58, %v3075_v9  ;;  %983 = vst [vmem:[#allocation2 + $0x28] sm:$0xff] %v971_v41  ;;  %984 = vst [vmem:[#allocation2 + $0x48] sm:$0xff] %v972_v20  ;;  %v974_v56 = vadd.f32 %v962_v57, %v3078_v40  ;;  %v999_v54 = vadd.f32 %v927_v31, %v4104_v2 }
  0xdc   : > { %v929_v21 = vmul.f32 %v917_v0, %v917_v0  ;;  %v930_v27 = vmul.f32 %v918_v61, %v918_v61  ;;  %v921_v63 = vmul.f32 %v909_v18, %v909_v18  ;;  %v1000_v30 = vadd.f32 %v928_v51, %v4105_v52 }
  0xdd   : > { %985 = vst [vmem:[#allocation2 + $0x10] sm:$0xff] %v973_v15  ;;  %986 = vst [vmem:[#allocation2 + $0x40] sm:$0xff] %v974_v56  ;;  %v931_v9 = vmul.f32 %v919_v39, %v919_v39  ;;  %v932_v55 = vmul.f32 %v920_v25, %v920_v25  ;;  %v922_v3 = vmul.f32 %v910_v24, %v910_v24 }
  0xde   : > { %1011 = vst [vmem:[#allocation3 + $0x48] sm:$0xff] %v999_v54  ;;  %v1001_v4 = vadd.f32 %v929_v21, %v4106_v43  ;;  %v1002_v40 = vadd.f32 %v930_v27, %v4107_v7  ;;  %v933_v16 = vmul.f32 %v921_v63, %v921_v63  ;;  %v923_v13 = vmul.f32 %v911_v26, %v911_v26 }
  0xdf   : > { %1012 = vst [vmem:[#allocation3] sm:$0xff] %v1000_v30  ;;  %v1003_v6 = vadd.f32 %v931_v9, %v4108_v50  ;;  %v1004_v8 = vadd.f32 %v932_v55, %v4109_v47  ;;  %v934_v35 = vmul.f32 %v922_v3, %v922_v3  ;;  %v924_v18 = vmul.f32 %v912_v14, %v912_v14 }
  0xe0   : > { %1013 = vst [vmem:[#allocation3 + $0x50] sm:$0xff] %v1001_v4  ;;  %1014 = vst [vmem:[#allocation3 + $0x30] sm:$0xff] %v1002_v40  ;;  %v1005_v12 = vadd.f32 %v933_v16, %v3105_v45  ;;  %v935_v10 = vmul.f32 %v923_v13, %v923_v13  ;;  %v925_v24 = vmul.f32 %v913_v33, %v913_v33 }
  0xe1   : > { %v926_v1 = vmul.f32 %v914_v19, %v914_v19  ;;  %1015 = vst [vmem:[#allocation3 + $0x8] sm:$0xff] %v1003_v6  ;;  %1016 = vst [vmem:[#allocation3 + $0x20] sm:$0xff] %v1004_v8  ;;  %v1006_v5 = vadd.f32 %v934_v35, %v3108_v32  ;;  %v936_v59 = vmul.f32 %v924_v18, %v924_v18 }
  0xe2   : > { %v1035_v26 = vmul.f32 %v927_v31, %v915_v34  ;;  %v1036_v58 = vmul.f32 %v928_v51, %v916_v36  ;;  %1017 = vst [vmem:[#allocation3 + $0x18] sm:$0xff] %v1005_v12  ;;  %v1007_v41 = vadd.f32 %v935_v10, %v3111_v22  ;;  %v937_v20 = vmul.f32 %v925_v24, %v925_v24 }
  0xe3   : > { %v938_v57 = vmul.f32 %v926_v1, %v926_v1  ;;  %v1037_v14 = vmul.f32 %v929_v21, %v917_v0  ;;  %1018 = vst [vmem:[#allocation3 + $0x40] sm:$0xff] %v1006_v5  ;;  %v1008_v15 = vadd.f32 %v936_v59, %v3114_v38  ;;  %v1038_v19 = vmul.f32 %v930_v27, %v918_v61 }
  0xe4   : > { %v1047_v45 = vadd.f32 %v1035_v26, %v3117_v17  ;;  %v1048_v33 = vadd.f32 %v1036_v58, %v3120_v53  ;;  %1019 = vst [vmem:[#allocation3 + $0x38] sm:$0xff] %v1007_v41  ;;  %v1009_v32 = vadd.f32 %v937_v20, %v3123_v48  ;;  %v1039_v31 = vmul.f32 %v931_v9, %v919_v39 }
  0xe5   : > { %v1010_v34 = vadd.f32 %v938_v57, %v3126_v44  ;;  %v1049_v36 = vadd.f32 %v1037_v14, %v3129_v11  ;;  %1020 = vst [vmem:[#allocation3 + $0x28] sm:$0xff] %v1008_v15  ;;  %v1050_v22 = vadd.f32 %v1038_v19, %v3132_v49  ;;  %v1040_v0 = vmul.f32 %v932_v55, %v920_v25 }
  0xe6   : > { %1059 = vst [vmem:[#allocation4 + $0x30] sm:$0xff] %v1047_v45  ;;  %1060 = vst [vmem:[#allocation4] sm:$0xff] %v1048_v33  ;;  %v1041_v38 = vmul.f32 %v933_v16, %v921_v63  ;;  %v1042_v56 = vmul.f32 %v934_v35, %v922_v3  ;;  %v1051_v17 = vadd.f32 %v1039_v31, %v3136_v28 }
  0xe7   : > { %1021 = vst [vmem:[#allocation3 + $0x58] sm:$0xff] %v1009_v32  ;;  %1022 = vst [vmem:[#allocation3 + $0x10] sm:$0xff] %v1010_v34  ;;  %v1043_v53 = vmul.f32 %v935_v10, %v923_v13  ;;  %v1044_v48 = vmul.f32 %v936_v59, %v924_v18  ;;  %v1045_v61 = vmul.f32 %v937_v20, %v925_v24 }
  0xe8   : > { %1061 = vst [vmem:[#allocation4 + $0x40] sm:$0xff] %v1049_v36  ;;  %1062 = vst [vmem:[#allocation4 + $0x58] sm:$0xff] %v1050_v22  ;;  %v1052_v44 = vadd.f32 %v1040_v0, %v3141_v23  ;;  %v1053_v11 = vadd.f32 %v1041_v38, %v3144_v62  ;;  %v1054_v51 = vadd.f32 %v1042_v56, %v3147_v60 }
  0xe9   : > { %v1046_v39 = vmul.f32 %v938_v57, %v926_v1  ;;  %1063 = vst [vmem:[#allocation4 + $0x8] sm:$0xff] %v1051_v17  ;;  %v1055_v49 = vadd.f32 %v1043_v53, %v3152_v46  ;;  %v1056_v25 = vadd.f32 %v1044_v48, %v3155_v42  ;;  %v1057_v2 = vadd.f32 %v1045_v61, %v3158_v37  ;;  %1074 = sbr.rel (%p2052_p6) target bundleno = 658 (0x292), region = 56 }
  0xea   : > { %1064 = vst [vmem:[#allocation4 + $0x10] sm:$0xff] %v1052_v44  ;;  %1065 = vst [vmem:[#allocation4 + $0x20] sm:$0xff] %v1053_v11 }
  0xeb   : > { %1066 = vst [vmem:[#allocation4 + $0x48] sm:$0xff] %v1054_v51  ;;  %v1058_v28 = vadd.f32 %v1046_v39, %v3165_v29  ;;  %1067 = vst [vmem:[#allocation4 + $0x38] sm:$0xff] %v1055_v49 }
  0xec   : > { %1068 = vst [vmem:[#allocation4 + $0x28] sm:$0xff] %v1056_v25  ;;  %1069 = vst [vmem:[#allocation4 + $0x18] sm:$0xff] %v1057_v2 }
  0xed   : > { %1070 = vst [vmem:[#allocation4 + $0x50] sm:$0xff] %v1058_v28 }
  0xee   : > { %v1125_v23 = vld [vmem:[#allocation3 + $0x50] sm:$0xff]  ;;  %v1123_v62 = vld [vmem:[#allocation3 + $0x48] sm:$0xff]  ;;  %v1124_v46 = vld [vmem:[#allocation3] sm:$0xff]  ;;  %v4110_v31 = vlaneseq  ;;  %s1714_s24 = sld [smem:[#allocation5]] }
  0xef   : > { %1139 = vadd.xlane.f32.xlu1 %v1125_v23  ;;  %1135 = vadd.xlane.f32.xlu0 %v1123_v62  ;;  %v1126_v60 = vld [vmem:[#allocation3 + $0x30] sm:$0xff]  ;;  %v1128_v42 = vld [vmem:[#allocation3 + $0x20] sm:$0xff]  ;;  %v1127_v37 = vld [vmem:[#allocation3 + $0x8] sm:$0xff] }
  0xf0   : > { %v1130_v29 = vld [vmem:[#allocation3 + $0x40] sm:$0xff]  ;;  %v1129_v54 = vld [vmem:[#allocation3 + $0x18] sm:$0xff]  ;;  %v1132_v21 = vld [vmem:[#allocation3 + $0x28] sm:$0xff]  ;;  %v1485_v22 = vshrl.u32 %v4110_v31, 7 }
  0xf1   : > { %v1131_v27 = vld [vmem:[#allocation3 + $0x38] sm:$0xff]  ;;  %v1134_v63 = vld [vmem:[#allocation3 + $0x10] sm:$0xff]  ;;  %v1172_v30 = vld [vmem:[#allocation4] sm:$0xff] }
  0xf2   : > { %v1133_v52 = vld [vmem:[#allocation3 + $0x58] sm:$0xff]  ;;  %v1171_v9 = vld [vmem:[#allocation4 + $0x30] sm:$0xff]  ;;  %v1173_v3 = vld [vmem:[#allocation4 + $0x40] sm:$0xff]  ;;  %v1486_v53 = vsub.s32 0, %v1485_v22  ;;  %v1502_v11 = vsub.s32 1, %v1485_v22  ;;  %v1558_v51 = vsub.s32 3, %v1485_v22 }
  0xf3   : > { %1141 = vadd.xlane.f32.xlu1 %v1126_v60  ;;  %1137 = vadd.xlane.f32.xlu0 %v1124_v46  ;;  %v1174_v55 = vld [vmem:[#allocation4 + $0x58] sm:$0xff]  ;;  %v1176_v43 = vld [vmem:[#allocation4 + $0x10] sm:$0xff]  ;;  %v1175_v4 = vld [vmem:[#allocation4 + $0x8] sm:$0xff]  ;;  %v1530_v25 = vsub.s32 2, %v1485_v22  ;;  %v1586_v2 = vsub.s32 4, %v1485_v22  ;;  %v1614_v28 = vsub.s32 5, %v1485_v22 }
  0xf4   : > { %v1178_v7 = vld [vmem:[#allocation4 + $0x48] sm:$0xff]  ;;  %v1177_v40 = vld [vmem:[#allocation4 + $0x20] sm:$0xff]  ;;  %v1179_v13 = vld [vmem:[#allocation4 + $0x38] sm:$0xff] }
  0xf5   : > { %v1180_v16 = vld [vmem:[#allocation4 + $0x28] sm:$0xff]  ;;  %v1182_v50 = vld [vmem:[#allocation4 + $0x50] sm:$0xff]  ;;  %v1181_v6 = vld [vmem:[#allocation4 + $0x18] sm:$0xff] }
  0xf6   : > { %v1076_v47 = vld [vmem:[#allocation2] sm:$0xff]  ;;  %v1075_v8 = vld [vmem:[#allocation2 + $0x30] sm:$0xff]  ;;  %v1078_v35 = vld [vmem:[#allocation2 + $0x18] sm:$0xff] }
  0xf7   : > { %1145 = vadd.xlane.f32.xlu1 %v1128_v42  ;;  %1143 = vadd.xlane.f32.xlu0 %v1127_v37  ;;  %v1077_v18 = vld [vmem:[#allocation2 + $0x58] sm:$0xff]  ;;  %v1080_v12 = vld [vmem:[#allocation2 + $0x20] sm:$0xff]  ;;  %v1079_v10 = vld [vmem:[#allocation2 + $0x50] sm:$0xff] }
  0xf8   : > { %v1082_v24 = vld [vmem:[#allocation2 + $0x38] sm:$0xff]  ;;  %v1081_v1 = vld [vmem:[#allocation2 + $0x8] sm:$0xff]  ;;  %v1086_v26 = vld [vmem:[#allocation2 + $0x40] sm:$0xff] }
  0xf9   : > { %v1084_v5 = vld [vmem:[#allocation2 + $0x48] sm:$0xff]  ;;  %v1085_v58 = vld [vmem:[#allocation2 + $0x10] sm:$0xff]  ;;  %v1483_v48 = vld [vmem:[#allocation8] sm:$0x3f] }
  0xfa   : > { %v1083_v59 = vld [vmem:[#allocation2 + $0x28] sm:$0xff]  ;;  %v3250_v62 = vrot.slane %v1483_v48, %v1486_v53  ;;  %v3258_v42 = vrot.slane %v1483_v48, %v1502_v11  ;;  %v3260_v37 = vrot.slane %v1483_v48, %v1558_v51 }
  0xfb   : > { %1149 = vadd.xlane.f32.xlu1 %v1130_v29  ;;  %1147 = vadd.xlane.f32.xlu0 %v1129_v54 }
  0xff   : > { %1153 = vadd.xlane.f32.xlu1 %v1132_v21  ;;  %1151 = vadd.xlane.f32.xlu0 %v1131_v27  ;;  %v3265_v21 = vrot.slane %v1483_v48, %v1530_v25  ;;  %v3267_v27 = vrot.slane %v1483_v48, %v1586_v2 }
 0x103   : > { %1157 = vadd.xlane.f32.xlu1 %v1134_v63  ;;  %1155 = vadd.xlane.f32.xlu0 %v1133_v52  ;;  %v3269_v63 = vrot.slane %v1483_v48, %v1614_v28 }
 0x107   : > { %1185 = vadd.xlane.f32.xlu1 %v1172_v30  ;;  %1183 = vadd.xlane.f32.xlu0 %v1171_v9 }
 0x10b   : > { %1189 = vadd.xlane.f32.xlu1 %v1174_v55  ;;  %1187 = vadd.xlane.f32.xlu0 %v1173_v3 }
 0x10f   : > { %1193 = vadd.xlane.f32.xlu1 %v1176_v43  ;;  %1191 = vadd.xlane.f32.xlu0 %v1175_v4 }
 0x113   : > { %1197 = vadd.xlane.f32.xlu1 %v1178_v7  ;;  %1195 = vadd.xlane.f32.xlu0 %v1177_v40 }
 0x117   : > { %1201 = vadd.xlane.f32.xlu1 %v1180_v16  ;;  %1199 = vadd.xlane.f32.xlu0 %v1179_v13 }
 0x11b   : > { %1205 = vadd.xlane.f32.xlu1 %v1182_v50  ;;  %1203 = vadd.xlane.f32.xlu0 %v1181_v6 }
 0x11f   : > { %1089 = vadd.xlane.f32.xlu1 %v1076_v47  ;;  %1087 = vadd.xlane.f32.xlu0 %v1075_v8 }
 0x123   : > { %1093 = vadd.xlane.f32.xlu1 %v1078_v35  ;;  %1091 = vadd.xlane.f32.xlu0 %v1077_v18 }
 0x127   : > { %1097 = vadd.xlane.f32.xlu1 %v1080_v12  ;;  %1095 = vadd.xlane.f32.xlu0 %v1079_v10 }
 0x12b   : > { %1101 = vadd.xlane.f32.xlu1 %v1082_v24  ;;  %1099 = vadd.xlane.f32.xlu0 %v1081_v1 }
 0x12f   : > { %1105 = vadd.xlane.f32.xlu1 %v1084_v5  ;;  %1103 = vadd.xlane.f32.xlu0 %v1083_v59 }
 0x133   : > { %1109 = vadd.xlane.f32.xlu1 %v1086_v26  ;;  %1107 = vadd.xlane.f32.xlu0 %v1085_v58 }
 0x178   : > { %v1140_v41 = vpop.xlane.xlu1 %1139  ;;  %v1136_v20 = vpop.xlane.xlu0 %1135 }
 0x179   : > { %v3231_v57 = vmul.f32 0.0016666667, %v1136_v20  ;;  %v3235_v33 = vmul.f32 0.0016666667, %v1140_v41 }
 0x17b   : > { %2233 = vrsqrt.f32 %v3231_v57  ;;  %v1315_v38 = vmul.f32 2.0, %v3231_v57  ;;  %v3253_v60 = vmul.f32 2.0, %v3235_v33  ;;  %v3277_v9 = vmul.f32 %v3250_v62, %v3231_v57 }
 0x17c   : > { %v1142_v14 = vpop.xlane.xlu1 %1141  ;;  %v1138_v15 = vpop.xlane.xlu0 %1137  ;;  %2235 = vrsqrt.f32 %v3235_v33  ;;  %v3281_v55 = vmul.f32 %v3250_v62, %v3235_v33  ;;  %vm1221_vm4 = vcmp.eq.f32.partialorder %v3231_v57, inf  ;;  %v1224_v3 = vand.u32 2147483648, %v3231_v57 }
 0x17d   : > { %v3233_v45 = vmul.f32 0.0016666667, %v1138_v15  ;;  %v3239_v36 = vmul.f32 0.0016666667, %v1142_v14  ;;  %v1327_v23 = vsub.f32 6.0, %v1315_v38  ;;  %vm1223_vm5 = vcmp.eq.f32.partialorder %v3231_v57, 0.0 }
 0x17e   : > { %vm1235_vm6 = vcmp.eq.f32.partialorder %v3235_v33, inf  ;;  %v1238_v7 = vand.u32 2147483648, %v3235_v33  ;;  %vm1237_vm10 = vcmp.eq.f32.partialorder %v3235_v33, 0.0 }
 0x17f   : > { %v1316_v19 = vmul.f32 2.0, %v3233_v45  ;;  %2237 = vrsqrt.f32 %v3233_v45  ;;  %v3271_v52 = vand.u32 2147483647, %v1327_v23  ;;  %v3286_v43 = vmul.f32 2.0, %v3239_v36 }
 0x180   : > { %v1146_v32 = vpop.xlane.xlu1 %1145  ;;  %v1144_v34 = vpop.xlane.xlu0 %1143  ;;  %2239 = vrsqrt.f32 %v3239_v36  ;;  %v3290_v4 = vmul.f32 %v3250_v62, %v3233_v45  ;;  %v3300_v13 = vmul.f32 %v3250_v62, %v3239_v36  ;;  %vm1228_vm7 = vcmp.eq.f32.partialorder %v3233_v45, inf }
 0x181   : > { %v1328_v0 = vsub.f32 6.0, %v1316_v19  ;;  %v3248_v44 = vmul.f32 0.0016666667, %v1146_v32  ;;  %v3256_v46 = vmul.f32 0.0016666667, %v1144_v34  ;;  %v1231_v35 = vand.u32 2147483648, %v3233_v45 }
 0x182   : > { %vm1242_vm8 = vcmp.eq.f32.partialorder %v3239_v36, inf  ;;  %v1245_v1 = vand.u32 2147483648, %v3239_v36  ;;  %vm1230_vm9 = vcmp.eq.f32.partialorder %v3233_v45, 0.0  ;;  %vm1244_vm11 = vcmp.eq.f32.partialorder %v3239_v36, 0.0 }
 0x183   : > { %v3246_v61 = vand.u32 2147483647, %v1328_v0  ;;  %v3315_v10 = vmul.f32 2.0, %v3248_v44  ;;  %v3318_v24 = vmul.f32 2.0, %v3256_v46  ;;  %v3330_v58 = vmul.f32 %v3250_v62, %v3248_v44 }
 0x184   : > { %v1150_v56 = vpop.xlane.xlu1 %1149  ;;  %v1148_v17 = vpop.xlane.xlu0 %1147  ;;  %v3334_v41 = vmul.f32 %v3250_v62, %v3256_v46  ;;  %vm1256_vm12 = vcmp.eq.f32.partialorder %v3248_v44, inf  ;;  %vm1258_vm13 = vcmp.eq.f32.partialorder %v3248_v44, 0.0  ;;  %vm1249_vm15 = vcmp.eq.f32.partialorder %v3256_v46, inf }
 0x185   : > { %2241 = vrsqrt.f32 %v3246_v61  ;;  %v3296_v16 = vmul.f32 0.0016666667, %v1150_v56  ;;  %v3306_v6 = vmul.f32 0.0016666667, %v1148_v17  ;;  %vm1360_vm14 = vcmp.eq.f32.partialorder %v3246_v61, inf }
 0x186   : > { %2243 = vrsqrt.f32 %v3248_v44  ;;  %vm1362_vm0 = vcmp.eq.f32.partialorder %v3246_v61, 0.0  ;;  %vm1251_vm1 = vcmp.eq.f32.partialorder %v3256_v46, 0.0  ;;  %vm1353_vm3 = vcmp.eq.f32.partialorder %v3271_v52, inf }
 0x187   : > { %2245 = vrsqrt.f32 %v3256_v46  ;;  %4112 = vst [vmem:[#allocation31_spill] sm:$0xff] %v3306_v6  ;;  %v3339_v20 = vmul.f32 2.0, %v3296_v16  ;;  %v3347_v32 = vmul.f32 2.0, %v3306_v6  ;;  %v3359_v38 = vmul.f32 %v3250_v62, %v3296_v16 }
 0x188   : > { %v1154_v39 = vpop.xlane.xlu1 %1153  ;;  %v1152_v49 = vpop.xlane.xlu0 %1151  ;;  %2247 = vrsqrt.f32 %v3271_v52  ;;  %v3363_v56 = vmul.f32 %v3250_v62, %v3306_v6  ;;  %vm1270_vm2 = vcmp.eq.f32.partialorder %v3296_v16, inf }
 0x189   : > { %v3273_v30 = vpop.eup %2233  ;;  %v3324_v59 = vmul.f32 0.0016666667, %v1154_v39  ;;  %v3326_v26 = vmul.f32 0.0016666667, %v1152_v49  ;;  %2249 = vrsqrt.f32 %v3296_v16 }
 0x18a   : > { %v3304_v50 = vpop.eup %2235  ;;  %v1220_v18 = vmul.f32 %v3273_v30, %v3231_v57  ;;  %4114 = vst [vmem:[#allocation33_spill] sm:$0xff] %v3363_v56  ;;  %2251 = vrsqrt.f32 %v3306_v6 }
 0x18b   : > { %4111 = vst [vmem:[#allocation30_spill] sm:$0xff] %v3304_v50  ;;  %v1234_v14 = vmul.f32 %v3304_v50, %v3235_v33  ;;  %v3369_v48 = vmul.f32 2.0, %v3324_v59  ;;  %v3372_v11 = vmul.f32 2.0, %v3326_v26  ;;  %2253 = vrsqrt.f32 %v3324_v59 }
 0x18c   : > { %v1158_v29 = vpop.xlane.xlu1 %1157  ;;  %v3263_v54 = vpop.xlane.xlu0 %1155  ;;  %v1222_v0 = vsel %vm1221_vm4, %v3231_v57, %v1220_v18  ;;  %2255 = vrsqrt.f32 %v3326_v26  ;;  %v3408_v51 = vmul.f32 %v3250_v62, %v3326_v26  ;;  %vm1284_vm4 = vcmp.eq.f32.partialorder %v3324_v59, inf }
 0x18d   : > { %v3312_v12 = vpop.eup %2237  ;;  %v3377_v49 = vmul.f32 0.0016666667, %v1158_v29  ;;  %v1225_v25 = vsel %vm1223_vm5, %v1224_v3, %v1222_v0  ;;  %v1236_v2 = vsel %vm1235_vm6, %v3235_v33, %v1234_v14  ;;  %v3397_v3 = vmul.f32 0.0016666667, %v3263_v54 }
 0x18e   : > { %v3322_v5 = vpop.eup %2239  ;;  %v1227_v22 = vmul.f32 %v3312_v12, %v3233_v45  ;;  %v3401_v0 = vmul.f32 %v3250_v62, %v3324_v59  ;;  %vm1277_vm5 = vcmp.eq.f32.partialorder %v3326_v26, inf  ;;  %vm1355_vm6 = vcmp.eq.f32.partialorder %v3271_v52, 0.0 }
 0x18f   : > { %4113 = vst [vmem:[#allocation32_spill] sm:$0xff] %v3322_v5  ;;  %v1241_v17 = vmul.f32 %v3322_v5, %v3239_v36  ;;  %v3429_v54 = vmul.f32 2.0, %v3377_v49  ;;  %v3440_v19 = vmul.f32 2.0, %v3397_v3  ;;  %v3445_v15 = vmul.f32 %v3250_v62, %v3377_v49 }
 0x190   : > { %v1186_v47 = vpop.xlane.xlu1 %1185  ;;  %v1184_v8 = vpop.xlane.xlu0 %1183  ;;  %v1229_v29 = vsel %vm1228_vm7, %v3233_v45, %v1227_v22  ;;  %v3411_v22 = vmul.f32 %v3260_v37, %v1225_v25  ;;  %vm1286_vm7 = vcmp.eq.f32.partialorder %v3324_v59, 0.0 }
 0x191   : > { %v1208_v23 = vmul.f32 0.0016666667, %v1186_v47  ;;  %v1207_v14 = vmul.f32 0.0016666667, %v1184_v8  ;;  %v1243_v47 = vsel %vm1242_vm8, %v3239_v36, %v1241_v17  ;;  %v1232_v8 = vsel %vm1230_vm9, %v1231_v35, %v1229_v29  ;;  %4117 = vst [vmem:[#allocation36_spill] sm:$0xff] %v3440_v19 }
 0x192   : > { %v2242_v39 = vpop.eup %2241  ;;  %v1239_v17 = vsel %vm1237_vm10, %v1238_v7, %v1236_v2  ;;  %v1246_v33 = vsel %vm1244_vm11, %v1245_v1, %v1243_v47  ;;  %v1363_v7 = vand.u32 2147483648, %v3246_v61  ;;  %v3453_v36 = vmul.f32 %v3260_v37, %v1232_v8 }
 0x193   : > { %v3385_v28 = vpop.eup %2243  ;;  %v1359_v57 = vmul.f32 %v2242_v39, %v3246_v61  ;;  %v1505_v45 = vmul.f32 %v3258_v42, %v1208_v23  ;;  %v3450_v23 = vmul.f32 %v3250_v62, %v3397_v3  ;;  %v3456_v1 = vmul.f32 %v3260_v37, %v1239_v17 }
 0x194   : > { %v1190_v34 = vpop.xlane.xlu1 %1189  ;;  %v3349_v31 = vpop.xlane.xlu0 %1187  ;;  %4115 = vst [vmem:[#allocation34_spill] sm:$0xff] %v3385_v28  ;;  %v1255_v39 = vmul.f32 %v3385_v28, %v3248_v44  ;;  %v3459_v56 = vmul.f32 %v3260_v37, %v1246_v33  ;;  %vm1272_vm8 = vcmp.eq.f32.partialorder %v3296_v16, 0.0  ;;  %vm1263_vm9 = vcmp.eq.f32.partialorder %v3306_v6, inf }
 0x195   : > { %v1361_v25 = vsel %vm1360_vm14, %v3246_v61, %v1359_v57  ;;  %v3426_v40 = vpop.eup %2245  ;;  %v1504_v57 = vmul.f32 %v3258_v42, %v1207_v14  ;;  %4118 = vst [vmem:[#allocation37_spill] sm:$0xff] %v3456_v1  ;;  %v3470_v8 = vadd.f32 %v1505_v45, %v3290_v4  ;;  %v1210_v17 = vmul.f32 0.0016666667, %v1190_v34 }
 0x196   : > { %4116 = vst [vmem:[#allocation35_spill] sm:$0xff] %v3426_v40  ;;  %v2248_v2 = vpop.eup %2247  ;;  %v1364_v47 = vsel %vm1362_vm0, %v1363_v7, %v1361_v25  ;;  %4119 = vst [vmem:[#allocation38_spill] sm:$0xff] %v3459_v56  ;;  %v1257_v14 = vsel %vm1256_vm12, %v3248_v44, %v1255_v39  ;;  %v1248_v61 = vmul.f32 %v3426_v40, %v3256_v46  ;;  %v1209_v4 = vmul.f32 0.0016666667, %v3349_v31 }
 0x197   : > { %v3467_v62 = vmul.f32 0.5, %v1364_v47  ;;  %v1352_v7 = vmul.f32 %v2248_v2, %v3271_v52  ;;  %v3474_v28 = vpop.eup %2249  ;;  %v3477_v39 = vadd.f32 %v1504_v57, %v3277_v9  ;;  %v1356_v2 = vand.u32 2147483648, %v3271_v52 }
 0x198   : > { %v3387_v18 = vpop.xlane.xlu1 %1193  ;;  %v3389_v53 = vpop.xlane.xlu0 %1191  ;;  %4120 = vst [vmem:[#allocation39_spill] sm:$0xff] %v3474_v28  ;;  %v4122_v57 = vand.u32 2147483648, %v3248_v44  ;;  %v1250_v1 = vsel %vm1249_vm15, %v3256_v46, %v1248_v61  ;;  %v1507_v5 = vmul.f32 %v3258_v42, %v1210_v17  ;;  %v1506_v61 = vmul.f32 %v3258_v42, %v1209_v4 }
 0x199   : > { %v1448_v34 = vsub.f32 1.0, %v3467_v62  ;;  %v1354_v45 = vsel %vm1353_vm3, %v3271_v52, %v1352_v7  ;;  %v3486_v47 = vpop.eup %2251  ;;  %vm1279_vm10 = vcmp.eq.f32.partialorder %v3326_v26, 0.0  ;;  %vm1298_vm11 = vcmp.eq.f32.partialorder %v3377_v49, inf }
 0x19a   : > { %4121 = vst [vmem:[#allocation40_spill] sm:$0xff] %v3486_v47  ;;  %v3496_v31 = vpop.eup %2253  ;;  %vm1300_vm12 = vcmp.eq.f32.partialorder %v3377_v49, 0.0  ;;  %vm1293_vm14 = vcmp.eq.f32.partialorder %v3397_v3, 0.0 }
 0x19b   : > { %2257 = vrcp.f32 %v1448_v34  ;;  %v3503_v56 = vpop.eup %2255 }
 0x19c   : > { %v3432_v35 = vpop.xlane.xlu1 %1197  ;;  %v3434_v29 = vpop.xlane.xlu0 %1195  ;;  %4123 = vst [vmem:[#allocation41_spill] sm:$0xff] %v3503_v56  ;;  %2259 = vrsqrt.f32 %v3377_v49 }
 0x19d   : > { %2261 = vrsqrt.f32 %v3397_v3 }
 0x1a0   : > { %v1202_v19 = vpop.xlane.xlu1 %1201  ;;  %v1200_v25 = vpop.xlane.xlu0 %1199 }
 0x1a1   : > { %v1216_v40 = vmul.f32 0.0016666667, %v1202_v19  ;;  %v1215_v50 = vmul.f32 0.0016666667, %v1200_v25  ;;  %v1260_v25 = vsel %vm1258_vm13, %v4122_v57, %v1257_v14  ;;  %vm1291_vm13 = vcmp.eq.f32.partialorder %v3397_v3, inf }
 0x1a3   : > { %v1513_v9 = vmul.f32 %v3258_v42, %v1216_v40  ;;  %v1512_v19 = vmul.f32 %v3258_v42, %v1215_v50  ;;  %v1269_v40 = vmul.f32 %v3474_v28, %v3296_v16  ;;  %v1357_v50 = vsel %vm1355_vm6, %v1356_v2, %v1354_v45 }
 0x1a4   : > { %v1206_v7 = vpop.xlane.xlu1 %1205  ;;  %v1204_v33 = vpop.xlane.xlu0 %1203  ;;  %v3517_v34 = vmul.f32 0.5, %v1357_v50  ;;  %v4124_v45 = vand.u32 2147483648, %v3256_v46 }
 0x1a5   : > { %v3506_v44 = vadd.f32 %v1513_v9, %v3401_v0  ;;  %v3509_v52 = vadd.f32 %v1512_v19, %v3408_v51  ;;  %v1218_v14 = vmul.f32 0.0016666667, %v1206_v7  ;;  %v1217_v57 = vmul.f32 0.0016666667, %v1204_v33 }
 0x1a6   : > { %v1283_v33 = vmul.f32 %v3496_v31, %v3324_v59  ;;  %v1253_v2 = vsel %vm1251_vm1, %v4124_v45, %v1250_v1  ;;  %v1276_v9 = vmul.f32 %v3503_v56, %v3326_v26  ;;  %v1447_v19 = vsub.f32 1.0, %v3517_v34 }
 0x1a7   : > { %v1515_v51 = vmul.f32 %v3258_v42, %v1218_v14  ;;  %v1514_v0 = vmul.f32 %v3258_v42, %v1217_v57  ;;  %v1330_v7 = vsub.f32 6.0, %v3286_v43  ;;  %v1271_v46 = vsel %vm1270_vm2, %v3296_v16, %v1269_v40 }
 0x1a8   : > { %v1090_v17 = vpop.xlane.xlu1 %1089  ;;  %v1088_v4 = vpop.xlane.xlu0 %1087  ;;  %2263 = vrcp.f32 %v1447_v19  ;;  %v4125_v45 = vsub.f32 6.0, %v3253_v60  ;;  %v1212_v43 = vmul.f32 0.0016666667, %v3387_v18  ;;  %v1278_v60 = vsel %vm1277_vm5, %v3326_v26, %v1276_v9 }
 0x1a9   : > { %v3534_v50 = vadd.f32 %v1515_v51, %v3445_v15  ;;  %v3537_v14 = vadd.f32 %v1514_v0, %v3450_v23  ;;  %v1112_v57 = vmul.f32 0.0016666667, %v1090_v17  ;;  %v1111_v28 = vmul.f32 0.0016666667, %v1088_v4 }
 0x1aa   : > { %v3542_v1 = vand.u32 2147483647, %v1330_v7  ;;  %v3546_v56 = vand.u32 2147483647, %v4125_v45  ;;  %v1262_v23 = vmul.f32 %v3486_v47, %v3306_v6  ;;  %v1285_v51 = vsel %vm1284_vm4, %v3324_v59, %v1283_v33  ;;  %v2258_v45 = vpop.eup %2257 }
 0x1ab   : > { %v1533_v15 = vmul.f32 %v3265_v21, %v1112_v57  ;;  %v1532_v40 = vmul.f32 %v3265_v21, %v1111_v28  ;;  %v1332_v18 = vsub.f32 6.0, %v3315_v10  ;;  %v1211_v4 = vmul.f32 0.0016666667, %v3389_v53 }
 0x1ac   : > { %v1094_v0 = vpop.xlane.xlu1 %1093  ;;  %v1092_v17 = vpop.xlane.xlu0 %1091  ;;  %2265 = vrsqrt.f32 %v3542_v1  ;;  %v3564_v7 = vmul.f32 %v3260_v37, %v1260_v25  ;;  %v3567_v33 = vmul.f32 %v3260_v37, %v1253_v2  ;;  %v3570_v28 = vadd.f32 %v1507_v5, %v3300_v13 }
 0x1ad   : > { %v1545_v19 = vadd.f32 %v1533_v15, %v3470_v8  ;;  %v3573_v57 = vadd.f32 %v1506_v61, %v3281_v55  ;;  %v4127_v9 = vand.u32 2147483648, %v3324_v59  ;;  %2267 = vrsqrt.f32 %v3546_v56 }
 0x1ae   : > { %4126 = vst [vmem:[#allocation42_spill] sm:$0xff] %v3567_v33  ;;  %v4128_v8 = vand.u32 2147483648, %v3296_v16  ;;  %v3590_v55 = vsel %vm1263_vm9, %v3306_v6, %v1262_v23  ;;  %v4131_v13 = vand.u32 2147483648, %v3326_v26  ;;  %v3597_v59 = vmul.f32 %v3258_v42, %v1212_v43 }
 0x1af   : > { %v1288_v10 = vsel %vm1286_vm7, %v4127_v9, %v1285_v51  ;;  %v1573_v53 = vadd.f32 %v3453_v36, %v1545_v19  ;;  %4130 = vst [vmem:[#allocation44_spill] sm:$0xff] %v3590_v55  ;;  %v1544_v36 = vadd.f32 %v1532_v40, %v3477_v39  ;;  %v1589_v16 = vmul.f32 %v3312_v12, %v3267_v27  ;;  %v3623_v40 = vpop.eup %2259 }
 0x1b0   : > { %v3585_v25 = vsel %vm1272_vm8, %v4128_v8, %v1271_v46  ;;  %v1281_v5 = vsel %vm1279_vm10, %v4131_v13, %v1278_v60  ;;  %v1098_v61 = vpop.xlane.xlu1 %1097  ;;  %v3600_v2 = vpop.xlane.xlu0 %1095  ;;  %v3604_v46 = vand.u32 2147483647, %v1332_v18  ;;  %v3607_v15 = vmul.f32 %v3258_v42, %v1211_v4 }
 0x1b1   : > { %4129 = vst [vmem:[#allocation43_spill] sm:$0xff] %v3585_v25  ;;  %v3610_v26 = vmul.f32 0.0016666667, %v3432_v35  ;;  %v3613_v43 = vmul.f32 0.0016666667, %v3434_v29  ;;  %v3616_v39 = vmul.f32 %v3260_v37, %v1288_v10  ;;  %v3619_v23 = vmul.f32 %v3260_v37, %v1281_v5  ;;  %v3629_v29 = vpop.eup %2261 }
 0x1b2   : > { %v1462_v12 = vmul.f32 %v2258_v45, %v3467_v62  ;;  %v1601_v51 = vadd.f32 %v1589_v16, %v1573_v53  ;;  %2269 = vrsqrt.f32 %v3604_v46  ;;  %v1114_v60 = vmul.f32 0.0016666667, %v1094_v0  ;;  %4132 = vst [vmem:[#allocation45_spill] sm:$0xff] %v3629_v29 }
 0x1b3   : > { %v1588_v35 = vmul.f32 %v3273_v30, %v3267_v27  ;;  %v1572_v18 = vadd.f32 %v3411_v22, %v1544_v36  ;;  %v1297_v0 = vmul.f32 %v3623_v40, %v3377_v49  ;;  %v1301_v9 = vand.u32 2147483648, %v3377_v49  ;;  %v3643_v30 = vld [vmem:[%s4033_s2] ss:$0 sm:$0xff] }
 0x1b4   : > { %v3632_v4 = vpop.xlane.xlu1 %1101  ;;  %v3634_v62 = vpop.xlane.xlu0 %1099  ;;  %v1617_v19 = vmul.f32 %v3269_v63, %v1462_v12  ;;  %v1294_v22 = vand.u32 2147483648, %v3397_v3  ;;  %vm1374_vm15 = vcmp.eq.f32.partialorder %v3542_v1, inf  ;;  %v1290_v8 = vmul.f32 %v3629_v29, %v3397_v3 }
 0x1b5   : > { %4133 = vst [vmem:[#allocation46_spill] sm:$0xff] %v3632_v4  ;;  %4134 = vst [vmem:[#allocation47_spill] sm:$0xff] %v3634_v62  ;;  %v1299_v53 = vsel %vm1298_vm11, %v3377_v49, %v1297_v0  ;;  %v1377_v13 = vand.u32 2147483648, %v3542_v1  ;;  %v2264_v5 = vpop.eup %2263  ;;  %v3654_v36 = vmul.f32 %v3265_v21, %v1114_v60  ;;  %v1113_v16 = vmul.f32 0.0016666667, %v1092_v17 }
 0x1b6   : > { %v1629_v10 = vadd.f32 %v1617_v19, %v1601_v51  ;;  %vm1376_vm0 = vcmp.eq.f32.partialorder %v3542_v1, 0.0  ;;  %vm1367_vm1 = vcmp.eq.f32.partialorder %v3546_v56, inf  ;;  %v1370_v45 = vand.u32 2147483648, %v3546_v56  ;;  %v3663_v0 = vld [vmem:[%s4034_s3] ss:$0 sm:$0xff] }
 0x1b7   : > { %v1460_v47 = vmul.f32 %v2264_v5, %v3517_v34  ;;  %v1600_v60 = vadd.f32 %v1588_v35, %v1572_v18  ;;  %v1292_v17 = vsel %vm1291_vm13, %v3397_v3, %v1290_v8  ;;  %vm1369_vm2 = vcmp.eq.f32.partialorder %v3546_v56, 0.0 }
 0x1b8   : > { %v1106_v12 = vpop.xlane.xlu1 %1105  ;;  %v1104_v51 = vpop.xlane.xlu0 %1103  ;;  %v1648_v19 = vadd.f32 %v3643_v30, %v1629_v10  ;;  %v1302_v10 = vsel %vm1300_vm12, %v1301_v9, %v1299_v53  ;;  %v1331_v25 = vsub.f32 6.0, %v3318_v24  ;;  %v1116_v29 = vmul.f32 0.0016666667, %v1098_v61 }
 0x1b9   : > { %v2266_v55 = vpop.eup %2265  ;;  %v1120_v33 = vmul.f32 0.0016666667, %v1106_v12  ;;  %v1119_v6 = vmul.f32 0.0016666667, %v1104_v51  ;;  %v1616_v4 = vmul.f32 %v3269_v63, %v1460_v47  ;;  %v1334_v34 = vsub.f32 6.0, %v3339_v20 }
 0x1ba   : > { %v1660_v62 = vmax.f32 %v1648_v19, 0.0  ;;  %v2268_v35 = vpop.eup %2267  ;;  %v1295_v5 = vsel %vm1293_vm14, %v1294_v22, %v1292_v17  ;;  %vm1388_vm3 = vcmp.eq.f32.partialorder %v3604_v46, inf  ;;  %v1571_v24 = vmul.f32 %v3260_v37, %v1302_v10 }
 0x1bb   : > { %v1541_v18 = vmul.f32 %v3265_v21, %v1120_v33  ;;  %v1540_v8 = vmul.f32 %v3265_v21, %v1119_v6  ;;  %v1628_v9 = vadd.f32 %v1616_v4, %v1600_v60  ;;  %v1373_v47 = vmul.f32 %v2266_v55, %v3542_v1 }
 0x1bc   : > { %v1679_v49 = vmul.f32 %v3663_v0, %v1660_v62  ;;  %v1110_v61 = vpop.xlane.xlu1 %1109  ;;  %v1108_v53 = vpop.xlane.xlu0 %1107  ;;  %v1570_v22 = vmul.f32 %v3260_v37, %v1295_v5  ;;  %v1366_v62 = vmul.f32 %v2268_v35, %v3546_v56  ;;  %vm1390_vm4 = vcmp.eq.f32.partialorder %v3604_v46, 0.0 }
 0x1bd   : > { %v1553_v20 = vadd.f32 %v1541_v18, %v3506_v44  ;;  %v1552_v33 = vadd.f32 %v1540_v8, %v3509_v52  ;;  %v1122_v12 = vmul.f32 0.0016666667, %v1110_v61  ;;  %v1121_v6 = vmul.f32 0.0016666667, %v1108_v53 }
 0x1be   : > { %1692 = vadd.xlane.f32.xlu1 %v1679_v49  ;;  %v1647_v3 = vadd.f32 %v3643_v30, %v1628_v9  ;;  %v1375_v4 = vsel %vm1374_vm15, %v3542_v1, %v1373_v47  ;;  %v1368_v10 = vsel %vm1367_vm1, %v3546_v56, %v1366_v62  ;;  %v1534_v56 = vmul.f32 %v3265_v21, %v1113_v16 }
 0x1bf   : > { %v2270_v51 = vpop.eup %2269  ;;  %v1581_v55 = vadd.f32 %v3616_v39, %v1553_v20  ;;  %v1580_v44 = vadd.f32 %v3619_v23, %v1552_v33  ;;  %v1543_v52 = vmul.f32 %v3265_v21, %v1122_v12  ;;  %v1542_v19 = vmul.f32 %v3265_v21, %v1121_v6 }
 0x1c0   : > { %v1659_v60 = vmax.f32 %v1647_v3, 0.0  ;;  %v1378_v17 = vsel %vm1376_vm0, %v1377_v13, %v1375_v4  ;;  %v1387_v18 = vmul.f32 %v2270_v51, %v3604_v46  ;;  %v1371_v23 = vsel %vm1369_vm2, %v1370_v45, %v1368_v10  ;;  %v4136_v3 = vld [vmem:[#allocation38_spill] sm:$0xff] }
 0x1c1   : > { %v1555_v35 = vadd.f32 %v1543_v52, %v3534_v50  ;;  %v1554_v39 = vadd.f32 %v1542_v19, %v3537_v14  ;;  %v3703_v8 = vmul.f32 0.5, %v1378_v17  ;;  %v3708_v49 = vmul.f32 0.5, %v1371_v23  ;;  %v4139_v51 = vld [vmem:[#allocation46_spill] sm:$0xff] }
 0x1c2   : > { %v1678_v5 = vmul.f32 %v3663_v0, %v1659_v60  ;;  %v1389_v1 = vsel %vm1388_vm3, %v3604_v46, %v1387_v18  ;;  %v1391_v13 = vand.u32 2147483648, %v3604_v46  ;;  %v3720_v53 = vand.u32 2147483647, %v1331_v25 }
 0x1c3   : > { %v1583_v9 = vadd.f32 %v1571_v24, %v1555_v35  ;;  %v3714_v61 = vadd.f32 %v1570_v22, %v1554_v39  ;;  %v1450_v50 = vsub.f32 1.0, %v3703_v8  ;;  %v1449_v14 = vsub.f32 1.0, %v3708_v49  ;;  %v4141_v35 = vld [vmem:[#allocation34_spill] sm:$0xff]  ;;  %v4142_v39 = vld [vmem:[#allocation36_spill] sm:$0xff] }
 0x1c4   : > { %1690 = vadd.xlane.f32.xlu0 %v1678_v5  ;;  %v1392_v45 = vsel %vm1390_vm4, %v1391_v13, %v1389_v1  ;;  %v1537_v47 = vmul.f32 %v3265_v21, %v1116_v29  ;;  %v3725_v24 = vand.u32 2147483647, %v1334_v34  ;;  %v1521_v33 = vadd.f32 %v3597_v59, %v3330_v58  ;;  %v4143_v5 = vld [vmem:[#allocation47_spill] sm:$0xff] }
 0x1c5   : > { %2271 = vrcp.f32 %v1450_v50  ;;  %v3723_v20 = vmul.f32 0.5, %v1392_v45  ;;  %v1520_v46 = vadd.f32 %v3607_v15, %v3334_v41  ;;  %v1511_v16 = vmul.f32 %v3258_v42, %v3610_v26 }
 0x1c6   : > { %2273 = vrcp.f32 %v1449_v14  ;;  %v3735_v25 = vmul.f32 %v3258_v42, %v3613_v43  ;;  %v1115_v29 = vmul.f32 0.0016666667, %v3600_v2  ;;  %v1547_v58 = vadd.f32 %v3654_v36, %v3570_v28 }
 0x1c7   : > { %v1452_v12 = vsub.f32 1.0, %v3723_v20  ;;  %2275 = vrsqrt.f32 %v3720_v53  ;;  %v1546_v59 = vadd.f32 %v1534_v56, %v3573_v57  ;;  %v1333_v41 = vsub.f32 6.0, %v3347_v32  ;;  %v4135_v32 = vld [vmem:[#allocation32_spill] sm:$0xff] }
 0x1c8   : > { %2277 = vrsqrt.f32 %v3725_v24  ;;  %v1549_v15 = vadd.f32 %v1537_v47, %v1521_v33  ;;  %v1336_v42 = vsub.f32 6.0, %v3369_v48  ;;  %v1597_v2 = vmul.f32 %v3496_v31, %v3267_v27 }
 0x1c9   : > { %2279 = vrcp.f32 %v1452_v12  ;;  %v3749_v26 = vadd.f32 %v1511_v16, %v3359_v38  ;;  %v3751_v43 = vand.u32 2147483647, %v1333_v41  ;;  %v1335_v28 = vsub.f32 6.0, %v3372_v11  ;;  %v4137_v38 = vld [vmem:[#allocation41_spill] sm:$0xff] }
 0x1ca   : > { %v1338_v57 = vsub.f32 6.0, %v3429_v54  ;;  %v1536_v36 = vmul.f32 %v3265_v21, %v1115_v29  ;;  %v1591_v34 = vmul.f32 %v4135_v32, %v3267_v27  ;;  %v3758_v6 = vand.u32 2147483647, %v1336_v42  ;;  %v4138_v54 = vld [vmem:[#allocation37_spill] sm:$0xff] }
 0x1cb   : > { %v3760_v48 = vadd.f32 %v1597_v2, %v1581_v55  ;;  %v1575_v31 = vadd.f32 %v4136_v3, %v1547_v58  ;;  %2281 = vrsqrt.f32 %v3751_v43  ;;  %v1596_v22 = vmul.f32 %v4137_v38, %v3267_v27 }
 0x1cc   : > { %v1599_v11 = vmul.f32 %v3623_v40, %v3267_v27  ;;  %v1574_v4 = vadd.f32 %v4138_v54, %v1546_v59  ;;  %v1577_v62 = vadd.f32 %v3564_v7, %v1549_v15  ;;  %v1118_v52 = vmul.f32 0.0016666667, %v4139_v51  ;;  %v4140_v40 = vld [vmem:[#allocation30_spill] sm:$0xff] }
 0x1cd   : > { %2283 = vrsqrt.f32 %v3758_v6  ;;  %v3772_v55 = vand.u32 2147483647, %v1335_v28  ;;  %v3774_v19 = vadd.f32 %v1596_v22, %v1580_v44  ;;  %v3776_v60 = vand.u32 2147483647, %v1338_v57  ;;  %v4144_v44 = vld [vmem:[#allocation45_spill] sm:$0xff] }
 0x1ce   : > { %v3778_v17 = vadd.f32 %v1599_v11, %v1583_v9  ;;  %v3780_v10 = vadd.f32 %v1536_v36, %v1520_v46  ;;  %v1590_v18 = vmul.f32 %v4140_v40, %v3267_v27  ;;  %v1593_v7 = vmul.f32 %v4141_v35, %v3267_v27 }
 0x1cf   : > { %v1337_v23 = vsub.f32 6.0, %v4142_v39  ;;  %v3788_v1 = vmul.f32 0.0016666667, %v4143_v5  ;;  %v1603_v13 = vadd.f32 %v1591_v34, %v1575_v31  ;;  %2285 = vrsqrt.f32 %v3772_v55 }
 0x1d0   : > { %v1598_v9 = vmul.f32 %v4144_v44, %v3267_v27  ;;  %v3794_v50 = vmul.f32 %v3265_v21, %v1118_v52  ;;  %v1602_v56 = vadd.f32 %v1590_v18, %v1574_v4  ;;  %v1605_v14 = vadd.f32 %v1593_v7, %v1577_v62 }
 0x1d1   : > { %2287 = vrsqrt.f32 %v3776_v60  ;;  %vm1381_vm5 = vcmp.eq.f32.partialorder %v3720_v53, inf  ;;  %vm1383_vm6 = vcmp.eq.f32.partialorder %v3720_v53, 0.0  ;;  %v3799_v47 = vand.u32 2147483647, %v1337_v23 }
 0x1d2   : > { %v2272_v45 = vpop.eup %2271  ;;  %v3802_v33 = vadd.f32 %v1598_v9, %v3714_v61  ;;  %v1384_v29 = vand.u32 2147483648, %v3720_v53  ;;  %vm1402_vm7 = vcmp.eq.f32.partialorder %v3725_v24, inf  ;;  %vm1404_vm8 = vcmp.eq.f32.partialorder %v3725_v24, 0.0 }
 0x1d3   : > { %v2274_v46 = vpop.eup %2273  ;;  %v1466_v16 = vmul.f32 %v2272_v45, %v3703_v8  ;;  %v1405_v59 = vand.u32 2147483648, %v3725_v24  ;;  %vm1395_vm9 = vcmp.eq.f32.partialorder %v3751_v43, inf  ;;  %2289 = vrsqrt.f32 %v3799_v47 }
 0x1d4   : > { %v2276_v12 = vpop.eup %2275  ;;  %v1464_v58 = vmul.f32 %v2274_v46, %v3708_v49  ;;  %vm1397_vm10 = vcmp.eq.f32.partialorder %v3751_v43, 0.0  ;;  %v1398_v15 = vand.u32 2147483648, %v3751_v43  ;;  %vm1416_vm11 = vcmp.eq.f32.partialorder %v3758_v6, inf }
 0x1d5   : > { %v2278_v61 = vpop.eup %2277  ;;  %v1619_v41 = vmul.f32 %v3269_v63, %v1466_v16  ;;  %v1380_v8 = vmul.f32 %v2276_v12, %v3720_v53  ;;  %vm1418_vm12 = vcmp.eq.f32.partialorder %v3758_v6, 0.0  ;;  %v1419_v32 = vand.u32 2147483648, %v3758_v6 }
 0x1d6   : > { %v2280_v42 = vpop.eup %2279  ;;  %v1618_v2 = vmul.f32 %v3269_v63, %v1464_v58  ;;  %v1401_v49 = vmul.f32 %v2278_v61, %v3725_v24  ;;  %vm1409_vm13 = vcmp.eq.f32.partialorder %v3772_v55, inf  ;;  %vm1411_vm14 = vcmp.eq.f32.partialorder %v3772_v55, 0.0 }
 0x1d7   : > { %v1631_v28 = vadd.f32 %v1619_v41, %v1603_v13  ;;  %v1470_v57 = vmul.f32 %v2280_v42, %v3723_v20  ;;  %v1382_v36 = vsel %vm1381_vm5, %v3720_v53, %v1380_v8  ;;  %v1412_v23 = vand.u32 2147483648, %v3772_v55 }
 0x1d8   : > { %v1630_v34 = vadd.f32 %v1618_v2, %v1602_v56  ;;  %v1385_v3 = vsel %vm1383_vm6, %v1384_v29, %v1382_v36  ;;  %v1403_v31 = vsel %vm1402_vm7, %v3725_v24, %v1401_v49  ;;  %v2282_v38 = vpop.eup %2281  ;;  %vm1430_vm15 = vcmp.eq.f32.partialorder %v3776_v60, inf }
 0x1d9   : > { %v1650_v22 = vadd.f32 %v3643_v30, %v1631_v28  ;;  %v1621_v20 = vmul.f32 %v3269_v63, %v1470_v57  ;;  %v3833_v11 = vmul.f32 0.5, %v1385_v3  ;;  %v1406_v54 = vsel %vm1404_vm8, %v1405_v59, %v1403_v31 }
 0x1da   : > { %v2284_v4 = vpop.eup %2283  ;;  %v1649_v53 = vadd.f32 %v3643_v30, %v1630_v34  ;;  %v3838_v62 = vmul.f32 0.5, %v1406_v54  ;;  %v1394_v51 = vmul.f32 %v2282_v38, %v3751_v43  ;;  %v1433_v61 = vand.u32 2147483648, %v3776_v60  ;;  %v4146_v38 = vld [vmem:[#allocation43_spill] sm:$0xff] }
 0x1db   : > { %v1662_v52 = vmax.f32 %v1650_v22, 0.0  ;;  %v1633_v40 = vadd.f32 %v1621_v20, %v1605_v14  ;;  %v1451_v18 = vsub.f32 1.0, %v3833_v11  ;;  %v1415_v35 = vmul.f32 %v2284_v4, %v3758_v6  ;;  %v4147_v20 = vld [vmem:[#allocation31_spill] sm:$0xff]  ;;  %v4149_v4 = vld [vmem:[#allocation44_spill] sm:$0xff] }
 0x1dc   : > { %v1661_v7 = vmax.f32 %v1649_v53, 0.0  ;;  %v1454_v39 = vsub.f32 1.0, %v3838_v62  ;;  %v1396_v24 = vsel %vm1395_vm9, %v3751_v43, %v1394_v51  ;;  %v2286_v5 = vpop.eup %2285  ;;  %vm1432_vm0 = vcmp.eq.f32.partialorder %v3776_v60, 0.0 }
 0x1dd   : > { %v1681_v13 = vmul.f32 %v3663_v0, %v1662_v52  ;;  %v1652_v44 = vadd.f32 %v3643_v30, %v1633_v40  ;;  %2291 = vrcp.f32 %v1451_v18  ;;  %v1399_v9 = vsel %vm1397_vm10, %v1398_v15, %v1396_v24  ;;  %v4152_v24 = vld [vmem:[#allocation39_spill] sm:$0xff] }
 0x1de   : > { %v2288_v56 = vpop.eup %2287  ;;  %v1680_v14 = vmul.f32 %v3663_v0, %v1661_v7  ;;  %2293 = vrcp.f32 %v1454_v39  ;;  %v3854_v45 = vmul.f32 0.5, %v1399_v9  ;;  %v1417_v46 = vsel %vm1416_vm11, %v3758_v6, %v1415_v35 }
 0x1df   : > { %1696 = vadd.xlane.f32.xlu1 %v1681_v13  ;;  %v1664_v16 = vmax.f32 %v1652_v44, 0.0  ;;  %v1420_v29 = vsel %vm1418_vm12, %v1419_v32, %v1417_v46  ;;  %v1408_v12 = vmul.f32 %v2286_v5, %v3772_v55  ;;  %v1429_v43 = vmul.f32 %v2288_v56, %v3776_v60 }
 0x1e0   : > { %1694 = vadd.xlane.f32.xlu0 %v1680_v14  ;;  %v1453_v58 = vsub.f32 1.0, %v3854_v45  ;;  %v1444_v59 = vmul.f32 0.5, %v1420_v29  ;;  %v2290_v41 = vpop.eup %2289  ;;  %v1538_v28 = vmul.f32 %v3265_v21, %v3788_v1  ;;  %v1551_v34 = vadd.f32 %v3794_v50, %v3749_v26  ;;  %v4145_v21 = vld [vmem:[#allocation33_spill] sm:$0xff]  ;;  %v4148_v50 = vld [vmem:[#allocation42_spill] sm:$0xff] }
 0x1e1   : > { %v1683_v8 = vmul.f32 %v3663_v0, %v1664_v16  ;;  %v1410_v6 = vsel %vm1409_vm13, %v3772_v55, %v1408_v12  ;;  %v1431_v15 = vsel %vm1430_vm15, %v3776_v60, %v1429_v43  ;;  %v1422_v32 = vmul.f32 %v2290_v41, %v3799_v47  ;;  %v4153_v16 = vld [vmem:[#allocation40_spill] sm:$0xff] }
 0x1e2   : > { %2295 = vrcp.f32 %v1453_v58  ;;  %v1456_v42 = vsub.f32 1.0, %v1444_v59  ;;  %v1413_v2 = vsel %vm1411_vm14, %v1412_v23, %v1410_v6  ;;  %v1434_v49 = vsel %vm1432_vm0, %v1433_v61, %v1431_v15 }
 0x1e3   : > { %1700 = vadd.xlane.f32.xlu1 %v1683_v8  ;;  %v1443_v57 = vmul.f32 0.5, %v1413_v2  ;;  %v1446_v36 = vmul.f32 0.5, %v1434_v49  ;;  %vm1423_vm1 = vcmp.eq.f32.partialorder %v3799_v47, inf  ;;  %v1426_v60 = vand.u32 2147483648, %v3799_v47 }
 0x1e4   : > { %2297 = vrcp.f32 %v1456_v42  ;;  %v1424_v31 = vsel %vm1423_vm1, %v3799_v47, %v1422_v32  ;;  %vm1425_vm2 = vcmp.eq.f32.partialorder %v3799_v47, 0.0  ;;  %v1522_v1 = vadd.f32 %v3735_v25, %v4145_v21  ;;  %v4151_v25 = vld [vmem:[#allocation35_spill] sm:$0xff] }
 0x1e5   : > { %v1455_v3 = vsub.f32 1.0, %v1443_v57  ;;  %v1458_v55 = vsub.f32 1.0, %v1446_v36  ;;  %v1567_v22 = vmul.f32 %v3260_v37, %v4146_v38  ;;  %vm1265_vm3 = vcmp.eq.f32.partialorder %v4147_v20, 0.0 }
 0x1e6   : > { %v1427_v26 = vsel %vm1425_vm2, %v1426_v60, %v1424_v31  ;;  %v1576_v54 = vadd.f32 %v4148_v50, %v3780_v10  ;;  %v4150_v53 = vand.u32 2147483648, %v4147_v20  ;;  %v1550_v47 = vadd.f32 %v1538_v28, %v1522_v1 }
 0x1e7   : > { %2299 = vrcp.f32 %v1455_v3  ;;  %v1445_v52 = vmul.f32 0.5, %v1427_v26  ;;  %v1579_v40 = vadd.f32 %v1567_v22, %v1551_v34  ;;  %v1592_v18 = vmul.f32 %v4151_v25, %v3267_v27 }
 0x1e8   : > { %v1267_v51 = vsel %vm1265_vm3, %v4150_v53, %v4149_v4  ;;  %2301 = vrcp.f32 %v1458_v55  ;;  %v1595_v23 = vmul.f32 %v4152_v24, %v3267_v27  ;;  %v1594_v29 = vmul.f32 %v4153_v16, %v3267_v27 }
 0x1e9   : > { %v1457_v35 = vsub.f32 1.0, %v1445_v52  ;;  %v1566_v39 = vmul.f32 %v3260_v37, %v1267_v51  ;;  %v1604_v13 = vadd.f32 %v1592_v18, %v1576_v54  ;;  %vm1728_vm4 = vcmask 7168  }
 0x1ea   : > { %v2292_v7 = vpop.eup %2291  ;;  %v1607_v56 = vadd.f32 %v1595_v23, %v1579_v40 }
 0x1eb   : > { %v2294_v10 = vpop.eup %2293  ;;  %v1468_v5 = vmul.f32 %v2292_v7, %v3833_v11  ;;  %2303 = vrcp.f32 %v1457_v35  ;;  %v1578_v44 = vadd.f32 %v1566_v39, %v1550_v47 }
 0x1ec   : > { %v1474_v9 = vmul.f32 %v2294_v10, %v3838_v62 }
 0x1ed   : > { %v1620_v14 = vmul.f32 %v3269_v63, %v1468_v5  ;;  %v1606_v61 = vadd.f32 %v1594_v29, %v1578_v44 }
 0x1ee   : > { %v1623_v46 = vmul.f32 %v3269_v63, %v1474_v9 }
 0x1ef   : > { %v2296_v37 = vpop.eup %2295  ;;  %v1632_v12 = vadd.f32 %v1620_v14, %v1604_v13 }
 0x1f0   : > { %v1635_v43 = vadd.f32 %v1623_v46, %v1607_v56  ;;  %v1472_v58 = vmul.f32 %v2296_v37, %v3854_v45 }
 0x1f1   : > { %v2298_v11 = vpop.eup %2297  ;;  %v1651_v41 = vadd.f32 %v3643_v30, %v1632_v12 }
 0x1f2   : > { %v1654_v8 = vadd.f32 %v3643_v30, %v1635_v43  ;;  %v1622_v62 = vmul.f32 %v3269_v63, %v1472_v58  ;;  %v1478_v6 = vmul.f32 %v2298_v11, %v1444_v59 }
 0x1f3   : > { %v1663_v15 = vmax.f32 %v1651_v41, 0.0 }
 0x1f4   : > { %v2300_v42 = vpop.eup %2299  ;;  %v1666_v2 = vmax.f32 %v1654_v8, 0.0  ;;  %v1634_v49 = vadd.f32 %v1622_v62, %v1606_v61  ;;  %v1625_v27 = vmul.f32 %v3269_v63, %v1478_v6 }
 0x1f5   : > { %v2302_v28 = vpop.eup %2301  ;;  %v1682_v32 = vmul.f32 %v3663_v0, %v1663_v15  ;;  %v1476_v34 = vmul.f32 %v2300_v42, %v1443_v57 }
 0x1f6   : > { %v1685_v45 = vmul.f32 %v3663_v0, %v1666_v2  ;;  %v1653_v60 = vadd.f32 %v3643_v30, %v1634_v49  ;;  %v1637_v3 = vadd.f32 %v1625_v27, %v3760_v48  ;;  %v1482_v55 = vmul.f32 %v2302_v28, %v1446_v36 }
 0x1f7   : > { %1698 = vadd.xlane.f32.xlu0 %v1682_v32  ;;  %v1624_v59 = vmul.f32 %v3269_v63, %v1476_v34 }
 0x1f8   : > { %v2304_v31 = vpop.eup %2303  ;;  %1704 = vadd.xlane.f32.xlu1 %v1685_v45  ;;  %v1665_v21 = vmax.f32 %v1653_v60, 0.0  ;;  %v1656_v1 = vadd.f32 %v3643_v30, %v1637_v3  ;;  %v1627_v38 = vmul.f32 %v3269_v63, %v1482_v55 }
 0x1f9   : > { %v1636_v22 = vadd.f32 %v1624_v59, %v3774_v19  ;;  %v1480_v57 = vmul.f32 %v2304_v31, %v1445_v52 }
 0x1fa   : > { %v1684_v20 = vmul.f32 %v3663_v0, %v1665_v21  ;;  %v1668_v26 = vmax.f32 %v1656_v1, 0.0  ;;  %v1639_v50 = vadd.f32 %v1627_v38, %v3778_v17 }
 0x1fb   : > { %v1655_v48 = vadd.f32 %v3643_v30, %v1636_v22  ;;  %v1626_v36 = vmul.f32 %v3269_v63, %v1480_v57 }
 0x1fc   : > { %1702 = vadd.xlane.f32.xlu0 %v1684_v20  ;;  %v1687_v54 = vmul.f32 %v3663_v0, %v1668_v26  ;;  %v1658_v4 = vadd.f32 %v3643_v30, %v1639_v50 }
 0x1fd   : > { %v1667_v53 = vmax.f32 %v1655_v48, 0.0  ;;  %v1638_v51 = vadd.f32 %v1626_v36, %v3802_v33  ;;  %v1715_v33 = vstv %s1714_s24 }
 0x1fe   : > { %1708 = vadd.xlane.f32.xlu1 %v1687_v54  ;;  %v1670_v19 = vmax.f32 %v1658_v4, 0.0 }
 0x1ff   : > { %v1686_v52 = vmul.f32 %v3663_v0, %v1667_v53  ;;  %v1657_v17 = vadd.f32 %v3643_v30, %v1638_v51 }
 0x200   : > { %v1689_v40 = vmul.f32 %v3663_v0, %v1670_v19 }
 0x201   : > { %1706 = vadd.xlane.f32.xlu0 %v1686_v52  ;;  %v1669_v63 = vmax.f32 %v1657_v17, 0.0 }
 0x202   : > { %1712 = vadd.xlane.f32.xlu1 %v1689_v40 }
 0x203   : > { %v1688_v47 = vmul.f32 %v3663_v0, %v1669_v63 }
 0x205   : > { %1710 = vadd.xlane.f32.xlu0 %v1688_v47 }
 0x247   : > { %v1693_v25 = vpop.xlane.xlu1 %1692 }
 0x248   : > { %v1717_v18 = vadd.f32 %v1715_v33, %v1693_v25 }
 0x24a   : > { %1730 = vst.msk [vmem:[%s2721_s6 + $0x8] sm:$0xff] %vm1728_vm4, %v1717_v18 }
 0x24d   : > { %v1691_v35 = vpop.xlane.xlu0 %1690 }
 0x24e   : > { %v1716_v30 = vadd.f32 %v1715_v33, %v1691_v35 }
 0x250   : > { %1729 = vst.msk [vmem:[%s2721_s6] sm:$0xff] %vm1728_vm4, %v1716_v30 }
 0x268   : > { %v1697_v7 = vpop.xlane.xlu1 %1696 }
 0x269   : > { %v1719_v39 = vadd.f32 %v1715_v33, %v1697_v7  ;;  %v1695_v24 = vpop.xlane.xlu0 %1694 }
 0x26a   : > { %v1718_v0 = vadd.f32 %v1715_v33, %v1695_v24 }
 0x26b   : > { %1732 = vst.msk [vmem:[%s2721_s6 + $0x18] sm:$0xff] %vm1728_vm4, %v1719_v39 }
 0x26c   : > { %1731 = vst.msk [vmem:[%s2721_s6 + $0x10] sm:$0xff] %vm1728_vm4, %v1718_v0  ;;  %v1701_v23 = vpop.xlane.xlu1 %1700 }
 0x26d   : > { %v1721_v10 = vadd.f32 %v1715_v33, %v1701_v23 }
 0x26f   : > { %1734 = vst.msk [vmem:[%s2721_s6 + $0x28] sm:$0xff] %vm1728_vm4, %v1721_v10 }
 0x280   : > { %v1699_v5 = vpop.xlane.xlu0 %1698 }
 0x281   : > { %v1720_v13 = vadd.f32 %v1715_v33, %v1699_v5  ;;  %v1705_v44 = vpop.xlane.xlu1 %1704 }
 0x282   : > { %v1723_v9 = vadd.f32 %v1715_v33, %v1705_v44 }
 0x283   : > { %1733 = vst.msk [vmem:[%s2721_s6 + $0x20] sm:$0xff] %vm1728_vm4, %v1720_v13 }
 0x284   : > { %1736 = vst.msk [vmem:[%s2721_s6 + $0x38] sm:$0xff] %vm1728_vm4, %v1723_v9 }
 0x285   : > { %v1703_v56 = vpop.xlane.xlu0 %1702 }
 0x286   : > { %v1722_v14 = vadd.f32 %v1715_v33, %v1703_v56 }
 0x287   : > { %v1709_v46 = vpop.xlane.xlu1 %1708 }
 0x288   : > { %1735 = vst.msk [vmem:[%s2721_s6 + $0x30] sm:$0xff] %vm1728_vm4, %v1722_v14  ;;  %v1725_v16 = vadd.f32 %v1715_v33, %v1709_v46 }
 0x28a   : > { %1738 = vst.msk [vmem:[%s2721_s6 + $0x48] sm:$0xff] %vm1728_vm4, %v1725_v16  ;;  %v1707_v29 = vpop.xlane.xlu0 %1706 }
 0x28b   : > { %v1724_v37 = vadd.f32 %v1715_v33, %v1707_v29  ;;  %v1713_v12 = vpop.xlane.xlu1 %1712 }
 0x28c   : > { %v1727_v43 = vadd.f32 %v1715_v33, %v1713_v12 }
 0x28d   : > { %1737 = vst.msk [vmem:[%s2721_s6 + $0x40] sm:$0xff] %vm1728_vm4, %v1724_v37 }
 0x28e   : > { %1740 = vst.msk [vmem:[%s2721_s6 + $0x58] sm:$0xff] %vm1728_vm4, %v1727_v43  ;;  %v1711_v58 = vpop.xlane.xlu0 %1710 }
 0x28f   : > { %v1726_v61 = vadd.f32 %v1715_v33, %v1711_v58 }
 0x291   : > { %1739 = vst.msk [vmem:[%s2721_s6 + $0x50] sm:$0xff] %vm1728_vm4, %v1726_v61 }
 0x292 PF: > { %p4154_p5 = scmp.ne.s32.totalorder %s4066_s17, 0 }
 0x293   : > { %s1748_s15 = smul.u32 (%p4154_p5), 12, %s2467_s26 }
 0x294   : > { %1747 = sbr.rel (!%p4154_p5) target bundleno = 718 (0x2ce), region = 60 }
 0x295   : > { %s2067_s29 = smul.u32 (%p4154_p5), 96, %s2467_s26  ;;  %s1749_s13 = ssub.s32 (%p4154_p5), 13, %s1748_s15 }
 0x296   : > { %p1750_p4 = scmp.lt.s32.totalorder (%p4154_p5), %s1749_s13, 12 }
 0x297   : > { %s3959_s12 = scalar_lea.vmem (%p4154_p5), %s4036_s5, %s2067_s29  }
 0x299   : > { %s4180_s13 = smov (!%p1750_p4, %s1749_s13), 12 }
 0x29a   : > { %s2055_s1 = sshll.u32 %s4180_s13, 7 }
 0x29b   : > { %p2058_p8 = scmp.eq.s32.totalorder %s2055_s1, 0 }
 0x29c   : > { %2305 = sdivrem.u32 (!%p2058_p8), %s4180_s13, 12 }
 0x29d   : > { %1758 = sbr.rel (%p2058_p8) target bundleno = 718 (0x2ce), region = 64 }
 0x2a5   : > { %s3965_s17 = spop.drf %2305 }
 0x2a6   : > { %p2059_p9 = scmp.le.s32.totalorder %s3965_s17, 0 }
 0x2a7   : > { %s4155_s26 = smov (!%p2059_p9), %s3959_s12  ;;  %s4156_s19 = smov (!%p2059_p9), %s2721_s6 }
 0x2a8   : > { %1971 = sbr.rel (%p2059_p9) target bundleno = 693 (0x2b5), region = 146  ;;  %s3974_s16 = smov (!%p2059_p9), 0  }
 0x2a9   : > { %s3976_s27 = smov (!%p2059_p9), 0  }
 0x2ad LB: >> { %v1845_v11 = vld [vmem:[%s2487_s19] sm:$0xff]  ;;  %v1847_v41 = vld [vmem:[%s2487_s19 + $0x8] sm:$0xff]  ;;  %v1849_v8 = vld [vmem:[%s2487_s19 + $0x10] sm:$0xff]  ;;  %s1869_s30 = sadd.s32 1, %s2491_s16  ;;  %s1839_s27 = sadd.s32 1, %s2495_s27   ;;  %s2495_s27 = sphi %s3976_s27, %s1839_s27   ;;  %s2491_s16 = sphi %s3974_s16, %s4157_s16   ;;  %s2487_s19 = sphi %s4156_s19, %s1874_s19   ;;  %s2483_s26 = sphi %s4155_s26, %s1875_s26  }
 0x2ae   : >> { %1846 = vst [vmem:[%s2483_s26] sm:$0xff] %v1845_v11  ;;  %1848 = vst [vmem:[%s2483_s26 + $0x8] sm:$0xff] %v1847_v41  ;;  %v1851_v62 = vld [vmem:[%s2487_s19 + $0x18] sm:$0xff]  ;;  %v1853_v6 = vld [vmem:[%s2487_s19 + $0x20] sm:$0xff]  ;;  %p1870_p10 = scmp.ge.s32.totalorder %s1869_s30, %s3965_s17  ;;  %p1838_p11 = scmp.ge.s32.totalorder %s1839_s27, %s3965_s17 }
 0x2af   : >> { %1850 = vst [vmem:[%s2483_s26 + $0x10] sm:$0xff] %v1849_v8  ;;  %v1855_v15 = vld [vmem:[%s2487_s19 + $0x28] sm:$0xff]  ;;  %1852 = vst [vmem:[%s2483_s26 + $0x18] sm:$0xff] %v1851_v62  ;;  %v1857_v42 = vld [vmem:[%s2487_s19 + $0x30] sm:$0xff] }
 0x2b0   : >> { %1854 = vst [vmem:[%s2483_s26 + $0x20] sm:$0xff] %v1853_v6  ;;  %1856 = vst [vmem:[%s2483_s26 + $0x28] sm:$0xff] %v1855_v15  ;;  %v1859_v2 = vld [vmem:[%s2487_s19 + $0x38] sm:$0xff]  ;;  %v1861_v49 = vld [vmem:[%s2487_s19 + $0x40] sm:$0xff]  ;;  %s4182_s30 = smov (%p1870_p10, %s1869_s30), 0  ;;  %1841 = sbr.rel (!%p1838_p11) target bundleno = 685 (0x2ad), region = 152 }
 0x2b1   : >> { %1858 = vst [vmem:[%s2483_s26 + $0x30] sm:$0xff] %v1857_v42  ;;  %1860 = vst [vmem:[%s2483_s26 + $0x38] sm:$0xff] %v1859_v2  ;;  %v1863_v27 = vld [vmem:[%s2487_s19 + $0x48] sm:$0xff]  ;;  %v1865_v28 = vld [vmem:[%s2487_s19 + $0x50] sm:$0xff]  ;;  %s1872_s20 = smul.u32 96, %s4182_s30  ;;  %s4157_s16 = smov %s4182_s30 }
 0x2b2   : >> { %1862 = vst [vmem:[%s2483_s26 + $0x40] sm:$0xff] %v1861_v49  ;;  %v1867_v32 = vld [vmem:[%s2487_s19 + $0x58] sm:$0xff]  ;;  %1864 = vst [vmem:[%s2483_s26 + $0x48] sm:$0xff] %v1863_v27 }
 0x2b3   : >> { %1866 = vst [vmem:[%s2483_s26 + $0x50] sm:$0xff] %v1865_v28  ;;  %1868 = vst [vmem:[%s2483_s26 + $0x58] sm:$0xff] %v1867_v32  ;;  %s1874_s19 = scalar_lea.vmem %s2721_s6, %s1872_s20 [#allocation10]   ;;  %s1875_s26 = scalar_lea.vmem %s3959_s12, %s1872_s20  }
 0x2b5 PF: > { %2307 = sdivrem.u32 %s4180_s13, 12 }
 0x2b6   : > { %s2060_s10 = smul.u32 96, %s3965_s17 }
 0x2b8   : > { %s1880_s11 = scalar_lea.vmem %s2721_s6, %s2060_s10 [#allocation10]   ;;  %s1882_s18 = scalar_lea.vmem %s3959_s12, %s2060_s10  }
 0x2be   : > { %s2308_s22 = spop.drf %2307 }
 0x2bf   : > { %p2062_p13 = scmp.le.s32.totalorder %s2308_s22, 0 }
 0x2c0   : > { %s2497_s25 = smov (!%p2062_p13), %s1882_s18   ;;  %s2501_s8 = smov (!%p2062_p13), %s1880_s11  }
 0x2c1   : > { %1985 = sbr.rel (%p2062_p13) target bundleno = 718 (0x2ce), region = 157  ;;  %s2505_s14 = smov (!%p2062_p13), 0  }
 0x2c2   : > { %s2509_s9 = smov (!%p2062_p13), 0  }
 0x2c6 LB: >> { %v1892_v34 = vld [vmem:[%s2503_s8] sm:$0xff]  ;;  %s1894_s24 = sadd.s32 1, %s2507_s14  ;;  %s1886_s9 = sadd.s32 1, %s2511_s9   ;;  %s2511_s9 = sphi %s2509_s9, %s1886_s9   ;;  %s2507_s14 = sphi %s2505_s14, %s2506_s14   ;;  %s2503_s8 = sphi %s2501_s8, %s1899_s8   ;;  %s2499_s25 = sphi %s2497_s25, %s1900_s25  }
 0x2c7   : >> { %1893 = vst [vmem:[%s2499_s25] sm:$0xff] %v1892_v34  ;;  %p1895_p0 = scmp.ge.s32.totalorder %s1894_s24, %s2308_s22  ;;  %p1885_p7 = scmp.ge.s32.totalorder %s1886_s9, %s2308_s22 }
 0x2c9   : >> { %s4184_s24 = smov (%p1895_p0, %s1894_s24), 0  ;;  %1888 = sbr.rel (!%p1885_p7) target bundleno = 710 (0x2c6), region = 163 }
 0x2ca   : >> { %s2063_s6 = sshll.u32 %s4184_s24, 3  ;;  %s2506_s14 = smov %s4184_s24  }
 0x2cb   : >> { %s1899_s8 = scalar_lea.vmem %s1880_s11, %s2063_s6 [#allocation10]   ;;  %s1900_s25 = scalar_lea.vmem %s1882_s18, %s2063_s6  }
 0x2ce PF: > { %s20_s28 = sadd.s32 1, %s2479_s28   ;;  %s4158_s20 = sld [smem:[#allocation13_spill]] }
 0x2cf   : > { %p17_p12 = scmp.ge.s32.totalorder %s20_s28, 6   ;;  %s4159_s21 = sld [smem:[#allocation18_spill]] }
 0x2d0   : > { %s4160_s15 = sld [smem:[#allocation14_spill]]  ;;  %s4165_s22 = smov %s2455_s23 }
 0x2d1   : > { %s4161_s24 = sld [smem:[#allocation19_spill]]  ;;  %s4167_s26 = smov %s2475_s4 }
 0x2d2   : > { %s4162_s25 = sld [smem:[#allocation15_spill]] }
 0x2d3   : > { %s4163_s27 = sld [smem:[#allocation16_spill]] }
 0x2d4   : > { %s4164_s29 = sld [smem:[#allocation17_spill]] }
 0x2d6   : > { %s4166_s23 = smov %s4160_s15  ;;  %19 = sbr.rel (!%p17_p12) target bundleno = 10 (0xa), region = 174 }
 0x2da   : > { %s4168_s4 = smov %s4164_s29 }
 0x2db   :  { %1916 = vsyncpa [#allocation7], 1 }
 0x2dc   :  { %1918 = vsyncpa [#allocation7 + $0x1], 1 }
 0x2dd   :  { %1919 = vsyncpa [#allocation9], 1 }

</bundles_post_ra>
